<compile_context>
chip_gen: v7x
topology: tpu7x:2x2x1
jax: 0.10.0
libtpu: 0.0.40
codegen_flags: <defaults>
</compile_context>

<pallas_src>
import numpy as np
import jax
import jax.numpy as jnp
from jax.experimental import pallas as pl
from jax.experimental.pallas import tpu as pltpu


def _round_up(n, m):
    return ((n + m - 1) // m) * m


# ----------------------------------------------------------------------------
# Fused kernel: TimeEncode + Q/K projections + edge softmax + aggregation + MLP
# ----------------------------------------------------------------------------
def make_kernel():
    f32 = jnp.float32

    def kernel(mem_ref, memef_ref, dt_ref,
               dtexp_ref, tewr_ref, tebr_ref,
               wq_ref, qte_ref, wkme_ref, wkte_ref,
               repl_ref, selexp_ref, blkexp_ref, summ_ref,
               w1a_ref, w1m_ref, b1_ref, w2_ref, b2_ref,
               out_ref):
        mem = mem_ref[...]            # [T, M]            dst memory
        memef = memef_ref[...]        # [T, D*(M+Ef)]     per-slot [src_mem ‖ edge_feat]
        dt = dt_ref[...]              # [T, Dp]           edge_ts - ts[src] (zero-padded)

        # --- Q = fc_Q([memory_dst, TimeEncode(0)]) ; TE(0) term folded into qte bias
        q = jnp.dot(mem, wq_ref[...], preferred_element_type=f32) + qte_ref[...]   # [T, HO]

        # --- per-slot time encoding, lane-expanded on the MXU (no per-slot loop)
        dt_exp = jnp.dot(dt, dtexp_ref[...], preferred_element_type=f32)           # [T, D*Temp]
        te_all = jnp.cos(dt_exp * tewr_ref[...] + tebr_ref[...])                   # [T, D*Temp]

        # --- K for all D slots at once (block-diagonal weights)
        k_all = (jnp.dot(memef, wkme_ref[...], preferred_element_type=f32) +
                 jnp.dot(te_all, wkte_ref[...], preferred_element_type=f32))       # [T, D*HO]

        # --- attention logits for every (slot, head), replicated over the O lanes
        q_rep = jnp.dot(q, repl_ref[...], preferred_element_type=f32)              # [T, D*HO]
        a_exp = jnp.dot(q_rep * k_all, selexp_ref[...],
                        preferred_element_type=f32)                                # [T, D*HO]

        # --- edge_softmax over the D incoming edges per head.
        # Row-global max instead of per-head max: softmax is invariant to any
        # per-(row, head) constant, and the global max avoids cross-lane shuffles.
        m = jnp.max(a_exp, axis=1, keepdims=True)
        p = jnp.exp(a_exp - m)                                                     # [T, D*HO]
        denom = jnp.dot(p, blkexp_ref[...], preferred_element_type=f32)            # [T, D*HO]
        sa = p / denom

        # --- weighted aggregation over the D slots (slot-sum on the MXU)
        agg = jnp.dot(sa * k_all, summ_ref[...], preferred_element_type=f32)       # [T, HO]

        # --- MergeLayer: fc2(relu(fc1([agg, memory_dst])))
        # concat removed (w1 split); 1/sqrt(out_feats) folded into w1a in the wrapper.
        h1 = (jnp.dot(agg, w1a_ref[...], preferred_element_type=f32) +
              jnp.dot(mem, w1m_ref[...], preferred_element_type=f32) + b1_ref[...])
        h1 = jnp.maximum(h1, 0.0)
        out = jnp.dot(h1, w2_ref[...], preferred_element_type=f32) + b2_ref[...]   # [T, O_PAD]
        out_ref[...] = out.astype(out_ref.dtype)

    return kernel


# ----------------------------------------------------------------------------
# Forward wrapper (dense fixed-in-degree mailbox formulation)
# ----------------------------------------------------------------------------
def temporal_gat_forward(params, memory, ts, src_idx, edge_ts, edge_feats,
                         num_heads, out_feats, tile=512, use_bf16=False):
    """
    memory:     [N, M]         node memories
    ts:         [N]            node timestamps
    src_idx:    [N, D] int32   source node of each of the D incoming edges of node i
    edge_ts:    [N, D]         edge timestamps
    edge_feats: [N, D, Ef]     edge features
    returns rst [N, out_feats]
    """
    N, D = src_idx.shape
    M = memory.shape[1]
    Ef = edge_feats.shape[2]
    H, O = num_heads, out_feats
    HO = H * O
    DHO = D * HO
    ME = M + Ef
    Temp = params["te_w"].shape[1]
    hidden = params["w1_t"].shape[1]
    O_PAD = _round_up(out_feats, 128)          # lane-dense output; sliced back below
    Dp = _round_up(D, 8)                       # pad dt contraction dim for alignment

    f32 = jnp.float32
    cdt = jnp.bfloat16 if use_bf16 else f32    # dtype of the heavy DMA operands

    # ---- kernel-ready parameters / constant 0-1 matrices (cheap, wrapper-side) ----
    eye_d = jnp.eye(D, dtype=f32)
    eye_ho = jnp.eye(HO, dtype=f32)
    wq_mem = params["wq_t"][:M].astype(cdt)                                  # [M, HO]
    qte = (jnp.cos(params["te_b"]) @ params["wq_t"][M:]).astype(f32)         # [1, HO]
    wk_me_bd = jnp.kron(eye_d, params["wk_t"][:ME]).astype(cdt)              # [D*ME, DHO]
    wk_te_bd = jnp.kron(eye_d, params["wk_t"][ME:]).astype(f32)              # [D*Temp, DHO]
    dtexp = jnp.pad(jnp.kron(eye_d, jnp.ones((1, Temp), f32)),
                    ((0, Dp - D), (0, 0)))                                   # [Dp, D*Temp]
    tewr = jnp.tile(params["te_w"].astype(f32), (1, D))                      # [1, D*Temp]
    tebr = jnp.tile(params["te_b"].astype(f32), (1, D))                      # [1, D*Temp]
    repl = jnp.kron(jnp.ones((1, D), f32), eye_ho)                           # [HO, DHO]
    selexp = jnp.kron(eye_d, jnp.kron(jnp.eye(H, dtype=f32),
                                      jnp.ones((O, O), f32)))                # [DHO, DHO]
    blkexp = jnp.kron(jnp.ones((D, D), f32), eye_ho)                         # [DHO, DHO]
    summ = jnp.kron(jnp.ones((D, 1), f32), eye_ho)                           # [DHO, HO]
    inv_sqrt_o = 1.0 / float(np.sqrt(O))
    w1a = (params["w1_t"][:HO] * inv_sqrt_o).astype(f32)                     # scale folded
    w1m = params["w1_t"][HO:].astype(cdt)                                    # [M, hidden]
    b1 = params["b1"].astype(f32)
    w2 = jnp.pad(params["w2_t"], ((0, 0), (0, O_PAD - out_feats))).astype(f32)
    b2 = jnp.pad(params["b2"], ((0, 0), (0, O_PAD - out_feats))).astype(f32)

    # ---- graph gather / dense mailbox slabs (lane-contiguous per slot) ----
    # TODO(synk): DGL graph plumbing (in_degrees()==0 check, add_self_loop, ragged
    # per-node edge_softmax) has no Pallas equivalent; this kernel assumes a dense
    # mailbox with exactly D valid incoming edges per node (no pad mask in softmax).
    src_mem = memory[src_idx]                                                # [N, D, M]
    memef = jnp.concatenate([src_mem, edge_feats], axis=-1) \
               .reshape(N, D * ME).astype(cdt)                               # [N, D*(M+Ef)]
    mem = memory.astype(cdt)
    dt = jnp.pad((edge_ts - ts[src_idx]).astype(f32), ((0, 0), (0, Dp - D)))  # [N, Dp]

    # ---- row tile selection -------------------------------------------------
    TILE = max(8, min(_round_up(tile, 8), _round_up(N, 8)))
    # Conservative VMEM cap: fits v5e's 16 MiB scoped default; v7x (64 MiB physical)
    # and v6e (128 MiB) are strictly roomier, so the same cap is safe everywhere.
    itemsize = 2 if use_bf16 else 4
    const_bytes = 4 * (D * ME * DHO + D * Temp * DHO + 2 * DHO * DHO + DHO * HO
                       + HO * DHO + M * HO + (HO + M) * hidden + hidden * O_PAD)
    row_bytes = (2 * (itemsize * (M + D * ME) + 4 * (Dp + O_PAD))            # dbl-buffered IO
                 + 4 * (8 * DHO + D * Temp + hidden + 2 * HO))               # live intermediates
    budget = 12 * 1024 * 1024
    max_tile = max(8, ((budget - 2 * const_bytes) // max(row_bytes, 1)) // 8 * 8)
    TILE = min(TILE, max_tile)
    # Keep >= 2 grid steps when possible so ("parallel",) can shard across v7x's 2 TCs.
    while TILE > 8 and _round_up(N, TILE) // TILE < 2:
        TILE = _round_up(TILE // 2, 8)

    N_pad = _round_up(N, TILE)
    pad = N_pad - N
    if pad:
        mem = jnp.pad(mem, ((0, pad), (0, 0)))
        memef = jnp.pad(memef, ((0, pad), (0, 0)))
        dt = jnp.pad(dt, ((0, pad), (0, 0)))

    row = lambda i: (i, 0)           # tiled along nodes
    fixed = lambda i: (0, 0)         # grid-invariant weights/constants (stay resident)

    inputs = [mem, memef, dt, dtexp, tewr, tebr, wq_mem, qte, wk_me_bd, wk_te_bd,
              repl, selexp, blkexp, summ, w1a, w1m, b1, w2, b2]
    in_specs = ([pl.BlockSpec((TILE, M), row),
                 pl.BlockSpec((TILE, D * ME), row),
                 pl.BlockSpec((TILE, Dp), row)]
                + [pl.BlockSpec(x.shape, fixed) for x in inputs[3:]])

    out = pl.pallas_call(
        make_kernel(),
        out_shape=jax.ShapeDtypeStruct((N_pad, O_PAD), jnp.float32),
        grid=(N_pad // TILE,),
        in_specs=in_specs,
        out_specs=pl.BlockSpec((TILE, O_PAD), row),
        compiler_params=pltpu.CompilerParams(
            dimension_semantics=("parallel",)),
    )(*inputs)

    return out[:N, :out_feats]


# ----------------------------------------------------------------------------
# Pure-JAX reference (for sanity check)
# ----------------------------------------------------------------------------
def reference_forward(params, memory, ts, src_idx, edge_ts, edge_feats,
                      num_heads, out_feats):
    N, D = src_idx.shape
    te_w = params["te_w"][0]
    te_b = params["te_b"][0]
    # Q path (TimeEncode(0))
    te_q = jnp.broadcast_to(jnp.cos(te_b), (N, te_b.shape[0]))
    q_in = jnp.concatenate([memory, te_q], axis=1)
    q = q_in @ params["wq_t"]                                    # [N, H*O]
    # K path
    dt = edge_ts - ts[src_idx]                                   # [N, D]
    te_k = jnp.cos(dt[..., None] * te_w + te_b)                  # [N, D, Temp]
    k_in = jnp.concatenate([memory[src_idx], edge_feats, te_k], axis=-1)
    k = jnp.einsum("ndk,kh->ndh", k_in, params["wk_t"])          # [N, D, H*O]
    kh = k.reshape(N, D, num_heads, out_feats)
    qh = q.reshape(N, num_heads, out_feats)
    a = jnp.einsum("ndho,nho->ndh", kh, qh)                      # [N, D, H]
    sa = jax.nn.softmax(a, axis=1) / np.sqrt(out_feats)
    agg = jnp.einsum("ndh,ndho->nho", sa, kh).reshape(N, num_heads * out_feats)
    m_in = jnp.concatenate([agg, memory], axis=1)
    h1 = jnp.maximum(m_in @ params["w1_t"] + params["b1"][0], 0.0)
    return h1 @ params["w2_t"] + params["b2"][0]


# ----------------------------------------------------------------------------
# Deterministic parameter construction (weights pre-transposed to [in, out])
# ----------------------------------------------------------------------------
def make_params(edge_feat_dim, memory_feats, temporal_feats, out_feats, num_heads, key):
    HO = num_heads * out_feats
    q_in = memory_feats + temporal_feats
    k_in = memory_feats + edge_feat_dim + temporal_feats
    m_in = HO + memory_feats
    hidden = 512

    # TimeEncode: w = 1 / 10**linspace(0, 9, dim), bias = 0 (as in the module)
    te_w = (1.0 / 10.0 ** np.linspace(0, 9, temporal_feats)).astype(np.float32)

    k1, k2, k3, k4, k5, k6 = jax.random.split(key, 6)

    def xavier_normal(k, fan_in, fan_out):
        std = float(np.sqrt(2.0 / (fan_in + fan_out)))
        return std * jax.random.normal(k, (fan_in, fan_out), jnp.float32)

    def uniform(k, shape, fan_in):
        b = 1.0 / float(np.sqrt(fan_in))
        return jax.random.uniform(k, shape, jnp.float32, -b, b)

    return {
        "te_w": jnp.asarray(te_w)[None, :],                       # [1, Temp]
        "te_b": jnp.zeros((1, temporal_feats), jnp.float32),      # [1, Temp]
        "wq_t": uniform(k1, (q_in, HO), q_in),                    # fc_Q (no bias)
        "wk_t": uniform(k2, (k_in, HO), k_in),                    # fc_K (no bias)
        "w1_t": xavier_normal(k3, m_in, hidden),                  # MergeLayer fc1
        "b1": uniform(k4, (1, hidden), m_in),
        "w2_t": xavier_normal(k5, hidden, out_feats),             # MergeLayer fc2
        "b2": uniform(k6, (1, out_feats), hidden),
    }


if __name__ == "__main__":
    # Small synthetic graph: N nodes, each with exactly D incoming edges.
    N, D = 8, 4
    edge_feat_dim, memory_feats, temporal_feats = 8, 32, 16
    out_feats, num_heads = 16, 2

    key = jax.random.PRNGKey(0)
    kp, km, kt, ke, kts = jax.random.split(key, 5)

    params = make_params(edge_feat_dim, memory_feats, temporal_feats,
                         out_feats, num_heads, kp)

    memory = jax.random.normal(km, (N, memory_feats), jnp.float32)
    ts = jax.random.uniform(kt, (N,), jnp.float32, 0.0, 10.0)
    edge_feats = jax.random.normal(ke, (N, D, edge_feat_dim), jnp.float32)
    edge_ts = jax.random.uniform(kts, (N, D), jnp.float32, 0.0, 20.0)
    # deterministic source node ids for each (dst, slot)
    src_idx = jnp.asarray(
        (np.arange(N)[:, None] * 3 + np.arange(D)[None, :] + 1) % N, jnp.int32)

    ref = reference_forward(params, memory, ts, src_idx, edge_ts, edge_feats,
                            num_heads, out_feats)

    # f32 path: tight check against the pure-JAX reference
    out = temporal_gat_forward(params, memory, ts, src_idx, edge_ts, edge_feats,
                               num_heads, out_feats)
    jax.block_until_ready(out)
    np.testing.assert_allclose(np.asarray(out), np.asarray(ref),
                               rtol=1e-4, atol=1e-4)

    # bf16 operand path (v6e/v7x DMA/MXU optimization): loose check
    out_bf16 = temporal_gat_forward(params, memory, ts, src_idx, edge_ts, edge_feats,
                                    num_heads, out_feats, use_bf16=True)
    jax.block_until_ready(out_bf16)
    np.testing.assert_allclose(np.asarray(out_bf16), np.asarray(ref),
                               rtol=5e-2, atol=5e-2)

    # TODO(synk): fc_V is defined but unused in the module's forward (K doubles as
    # the value), and the feat_emb_A embedding-list branch is dead code in forward;
    # neither is implemented.
    print("KERNEL_OK")
</pallas_src>

<mosaic_0001>
module attributes {stable_mosaic.version = 11 : i64} {
  func.func @kernel(%arg0: i32, %arg1: memref<8x32xf32, #tpu.memory_space<vmem>>, %arg2: memref<8x160xf32, #tpu.memory_space<vmem>>, %arg3: memref<8x8xf32, #tpu.memory_space<vmem>>, %arg4: memref<8x64xf32, #tpu.memory_space<vmem>>, %arg5: memref<1x64xf32, #tpu.memory_space<vmem>>, %arg6: memref<1x64xf32, #tpu.memory_space<vmem>>, %arg7: memref<32x32xf32, #tpu.memory_space<vmem>>, %arg8: memref<1x32xf32, #tpu.memory_space<vmem>>, %arg9: memref<160x128xf32, #tpu.memory_space<vmem>>, %arg10: memref<64x128xf32, #tpu.memory_space<vmem>>, %arg11: memref<32x128xf32, #tpu.memory_space<vmem>>, %arg12: memref<128x128xf32, #tpu.memory_space<vmem>>, %arg13: memref<128x128xf32, #tpu.memory_space<vmem>>, %arg14: memref<128x32xf32, #tpu.memory_space<vmem>>, %arg15: memref<32x512xf32, #tpu.memory_space<vmem>>, %arg16: memref<32x512xf32, #tpu.memory_space<vmem>>, %arg17: memref<1x512xf32, #tpu.memory_space<vmem>>, %arg18: memref<512x128xf32, #tpu.memory_space<vmem>>, %arg19: memref<1x128xf32, #tpu.memory_space<vmem>>, %arg20: memref<8x128xf32, #tpu.memory_space<vmem>>) attributes {dimension_semantics = [#tpu.dimension_semantics<parallel>], iteration_bounds = array<i64: 1>, scalar_prefetch = 0 : i64, scratch_operands = 0 : i64, tpu.core_type = #tpu.core_type<tc>, window_params = [{transform_indices = @transform_0, window_bounds = array<i64: 8, 32>}, {transform_indices = @transform_1, window_bounds = array<i64: 8, 160>}, {transform_indices = @transform_2, window_bounds = array<i64: 8, 8>}, {pipeline_mode = #tpu.pipeline_mode<synchronous>, transform_indices = @transform_3, window_bounds = array<i64: 8, 64>}, {pipeline_mode = #tpu.pipeline_mode<synchronous>, transform_indices = @transform_4, window_bounds = array<i64: 1, 64>}, {pipeline_mode = #tpu.pipeline_mode<synchronous>, transform_indices = @transform_5, window_bounds = array<i64: 1, 64>}, {pipeline_mode = #tpu.pipeline_mode<synchronous>, transform_indices = @transform_6, window_bounds = array<i64: 32, 32>}, {pipeline_mode = #tpu.pipeline_mode<synchronous>, transform_indices = @transform_7, window_bounds = array<i64: 1, 32>}, {pipeline_mode = #tpu.pipeline_mode<synchronous>, transform_indices = @transform_8, window_bounds = array<i64: 160, 128>}, {pipeline_mode = #tpu.pipeline_mode<synchronous>, transform_indices = @transform_9, window_bounds = array<i64: 64, 128>}, {pipeline_mode = #tpu.pipeline_mode<synchronous>, transform_indices = @transform_10, window_bounds = array<i64: 32, 128>}, {pipeline_mode = #tpu.pipeline_mode<synchronous>, transform_indices = @transform_11, window_bounds = array<i64: 128, 128>}, {pipeline_mode = #tpu.pipeline_mode<synchronous>, transform_indices = @transform_12, window_bounds = array<i64: 128, 128>}, {pipeline_mode = #tpu.pipeline_mode<synchronous>, transform_indices = @transform_13, window_bounds = array<i64: 128, 32>}, {pipeline_mode = #tpu.pipeline_mode<synchronous>, transform_indices = @transform_14, window_bounds = array<i64: 32, 512>}, {pipeline_mode = #tpu.pipeline_mode<synchronous>, transform_indices = @transform_15, window_bounds = array<i64: 32, 512>}, {pipeline_mode = #tpu.pipeline_mode<synchronous>, transform_indices = @transform_16, window_bounds = array<i64: 1, 512>}, {pipeline_mode = #tpu.pipeline_mode<synchronous>, transform_indices = @transform_17, window_bounds = array<i64: 512, 128>}, {pipeline_mode = #tpu.pipeline_mode<synchronous>, transform_indices = @transform_18, window_bounds = array<i64: 1, 128>}, {transform_indices = @transform_19, window_bounds = array<i64: 8, 128>}]} {
    %c0 = arith.constant 0 : index
    %c0_0 = arith.constant 0 : index
    %0 = vector.load %arg1[%c0, %c0_0] : memref<8x32xf32, #tpu.memory_space<vmem>>, vector<8x32xf32>
    %c0_1 = arith.constant 0 : index
    %c0_2 = arith.constant 0 : index
    %1 = vector.load %arg2[%c0_1, %c0_2] : memref<8x160xf32, #tpu.memory_space<vmem>>, vector<8x160xf32>
    %c0_3 = arith.constant 0 : index
    %c0_4 = arith.constant 0 : index
    %2 = vector.load %arg3[%c0_3, %c0_4] : memref<8x8xf32, #tpu.memory_space<vmem>>, vector<8x8xf32>
    %c0_5 = arith.constant 0 : index
    %c0_6 = arith.constant 0 : index
    %3 = vector.load %arg7[%c0_5, %c0_6] : memref<32x32xf32, #tpu.memory_space<vmem>>, vector<32x32xf32>
    %cst = arith.constant dense<0.000000e+00> : vector<8x32xf32>
    %4 = tpu.matmul %0, %3, %cst {dimension_numbers = #tpu.dot_dimension_numbers<[1], [0], [0], [1], [0, 0, 1, 1], [], []>} : vector<8x32xf32>, vector<32x32xf32>, vector<8x32xf32> -> vector<8x32xf32>
    %c0_7 = arith.constant 0 : index
    %c0_8 = arith.constant 0 : index
    %5 = vector.load %arg8[%c0_7, %c0_8] : memref<1x32xf32, #tpu.memory_space<vmem>>, vector<1x32xf32>
    %6 = vector.broadcast %5 : vector<1x32xf32> to vector<8x32xf32>
    %7 = arith.addf %4, %6 : vector<8x32xf32>
    %c0_9 = arith.constant 0 : index
    %c0_10 = arith.constant 0 : index
    %8 = vector.load %arg4[%c0_9, %c0_10] : memref<8x64xf32, #tpu.memory_space<vmem>>, vector<8x64xf32>
    %cst_11 = arith.constant dense<0.000000e+00> : vector<8x64xf32>
    %9 = tpu.matmul %2, %8, %cst_11 {dimension_numbers = #tpu.dot_dimension_numbers<[1], [0], [0], [1], [0, 0, 1, 1], [], []>} : vector<8x8xf32>, vector<8x64xf32>, vector<8x64xf32> -> vector<8x64xf32>
    %c0_12 = arith.constant 0 : index
    %c0_13 = arith.constant 0 : index
    %10 = vector.load %arg5[%c0_12, %c0_13] : memref<1x64xf32, #tpu.memory_space<vmem>>, vector<1x64xf32>
    %11 = vector.broadcast %10 : vector<1x64xf32> to vector<8x64xf32>
    %12 = arith.mulf %9, %11 : vector<8x64xf32>
    %c0_14 = arith.constant 0 : index
    %c0_15 = arith.constant 0 : index
    %13 = vector.load %arg6[%c0_14, %c0_15] : memref<1x64xf32, #tpu.memory_space<vmem>>, vector<1x64xf32>
    %14 = vector.broadcast %13 : vector<1x64xf32> to vector<8x64xf32>
    %15 = arith.addf %12, %14 : vector<8x64xf32>
    %16 = math.cos %15 : vector<8x64xf32>
    %c0_16 = arith.constant 0 : index
    %c0_17 = arith.constant 0 : index
    %17 = vector.load %arg9[%c0_16, %c0_17] : memref<160x128xf32, #tpu.memory_space<vmem>>, vector<160x128xf32>
    %cst_18 = arith.constant dense<0.000000e+00> : vector<8x128xf32>
    %18 = tpu.matmul %1, %17, %cst_18 {dimension_numbers = #tpu.dot_dimension_numbers<[1], [0], [0], [1], [0, 0, 1, 1], [], []>} : vector<8x160xf32>, vector<160x128xf32>, vector<8x128xf32> -> vector<8x128xf32>
    %c0_19 = arith.constant 0 : index
    %c0_20 = arith.constant 0 : index
    %19 = vector.load %arg10[%c0_19, %c0_20] : memref<64x128xf32, #tpu.memory_space<vmem>>, vector<64x128xf32>
    %cst_21 = arith.constant dense<0.000000e+00> : vector<8x128xf32>
    %20 = tpu.matmul %16, %19, %cst_21 {dimension_numbers = #tpu.dot_dimension_numbers<[1], [0], [0], [1], [0, 0, 1, 1], [], []>} : vector<8x64xf32>, vector<64x128xf32>, vector<8x128xf32> -> vector<8x128xf32>
    %21 = arith.addf %18, %20 : vector<8x128xf32>
    %c0_22 = arith.constant 0 : index
    %c0_23 = arith.constant 0 : index
    %22 = vector.load %arg11[%c0_22, %c0_23] : memref<32x128xf32, #tpu.memory_space<vmem>>, vector<32x128xf32>
    %cst_24 = arith.constant dense<0.000000e+00> : vector<8x128xf32>
    %23 = tpu.matmul %7, %22, %cst_24 {dimension_numbers = #tpu.dot_dimension_numbers<[1], [0], [0], [1], [0, 0, 1, 1], [], []>} : vector<8x32xf32>, vector<32x128xf32>, vector<8x128xf32> -> vector<8x128xf32>
    %24 = arith.mulf %23, %21 : vector<8x128xf32>
    %c0_25 = arith.constant 0 : index
    %c0_26 = arith.constant 0 : index
    %25 = vector.load %arg12[%c0_25, %c0_26] : memref<128x128xf32, #tpu.memory_space<vmem>>, vector<128x128xf32>
    %cst_27 = arith.constant dense<0.000000e+00> : vector<8x128xf32>
    %26 = tpu.matmul %24, %25, %cst_27 {dimension_numbers = #tpu.dot_dimension_numbers<[1], [0], [0], [1], [0, 0, 1, 1], [], []>} : vector<8x128xf32>, vector<128x128xf32>, vector<8x128xf32> -> vector<8x128xf32>
    %cst_28 = arith.constant dense<0xFF800000> : vector<8xf32>
    %27 = vector.multi_reduction <maximumf>, %26, %cst_28 [1] : vector<8x128xf32> to vector<8xf32>
    %28 = vector.shape_cast %27 : vector<8xf32> to vector<8x1xf32>
    %29 = vector.broadcast %28 : vector<8x1xf32> to vector<8x128xf32>
    %30 = arith.subf %26, %29 : vector<8x128xf32>
    %31 = math.exp %30 : vector<8x128xf32>
    %c0_29 = arith.constant 0 : index
    %c0_30 = arith.constant 0 : index
    %32 = vector.load %arg13[%c0_29, %c0_30] : memref<128x128xf32, #tpu.memory_space<vmem>>, vector<128x128xf32>
    %cst_31 = arith.constant dense<0.000000e+00> : vector<8x128xf32>
    %33 = tpu.matmul %31, %32, %cst_31 {dimension_numbers = #tpu.dot_dimension_numbers<[1], [0], [0], [1], [0, 0, 1, 1], [], []>} : vector<8x128xf32>, vector<128x128xf32>, vector<8x128xf32> -> vector<8x128xf32>
    %34 = arith.divf %31, %33 : vector<8x128xf32>
    %35 = arith.mulf %34, %21 : vector<8x128xf32>
    %c0_32 = arith.constant 0 : index
    %c0_33 = arith.constant 0 : index
    %36 = vector.load %arg14[%c0_32, %c0_33] : memref<128x32xf32, #tpu.memory_space<vmem>>, vector<128x32xf32>
    %cst_34 = arith.constant dense<0.000000e+00> : vector<8x32xf32>
    %37 = tpu.matmul %35, %36, %cst_34 {dimension_numbers = #tpu.dot_dimension_numbers<[1], [0], [0], [1], [0, 0, 1, 1], [], []>} : vector<8x128xf32>, vector<128x32xf32>, vector<8x32xf32> -> vector<8x32xf32>
    %c0_35 = arith.constant 0 : index
    %c0_36 = arith.constant 0 : index
    %38 = vector.load %arg15[%c0_35, %c0_36] : memref<32x512xf32, #tpu.memory_space<vmem>>, vector<32x512xf32>
    %cst_37 = arith.constant dense<0.000000e+00> : vector<8x512xf32>
    %39 = tpu.matmul %37, %38, %cst_37 {dimension_numbers = #tpu.dot_dimension_numbers<[1], [0], [0], [1], [0, 0, 1, 1], [], []>} : vector<8x32xf32>, vector<32x512xf32>, vector<8x512xf32> -> vector<8x512xf32>
    %c0_38 = arith.constant 0 : index
    %c0_39 = arith.constant 0 : index
    %40 = vector.load %arg16[%c0_38, %c0_39] : memref<32x512xf32, #tpu.memory_space<vmem>>, vector<32x512xf32>
    %cst_40 = arith.constant dense<0.000000e+00> : vector<8x512xf32>
    %41 = tpu.matmul %0, %40, %cst_40 {dimension_numbers = #tpu.dot_dimension_numbers<[1], [0], [0], [1], [0, 0, 1, 1], [], []>} : vector<8x32xf32>, vector<32x512xf32>, vector<8x512xf32> -> vector<8x512xf32>
    %42 = arith.addf %39, %41 : vector<8x512xf32>
    %c0_41 = arith.constant 0 : index
    %c0_42 = arith.constant 0 : index
    %43 = vector.load %arg17[%c0_41, %c0_42] : memref<1x512xf32, #tpu.memory_space<vmem>>, vector<1x512xf32>
    %44 = vector.broadcast %43 : vector<1x512xf32> to vector<8x512xf32>
    %45 = arith.addf %42, %44 : vector<8x512xf32>
    %cst_43 = arith.constant 0.000000e+00 : f32
    %46 = vector.broadcast %cst_43 : f32 to vector<8x512xf32>
    %47 = arith.maximumf %45, %46 : vector<8x512xf32>
    %c0_44 = arith.constant 0 : index
    %c0_45 = arith.constant 0 : index
    %48 = vector.load %arg18[%c0_44, %c0_45] : memref<512x128xf32, #tpu.memory_space<vmem>>, vector<512x128xf32>
    %cst_46 = arith.constant dense<0.000000e+00> : vector<8x128xf32>
    %49 = tpu.matmul %47, %48, %cst_46 {dimension_numbers = #tpu.dot_dimension_numbers<[1], [0], [0], [1], [0, 0, 1, 1], [], []>} : vector<8x512xf32>, vector<512x128xf32>, vector<8x128xf32> -> vector<8x128xf32>
    %c0_47 = arith.constant 0 : index
    %c0_48 = arith.constant 0 : index
    %50 = vector.load %arg19[%c0_47, %c0_48] : memref<1x128xf32, #tpu.memory_space<vmem>>, vector<1x128xf32>
    %51 = vector.broadcast %50 : vector<1x128xf32> to vector<8x128xf32>
    %52 = arith.addf %49, %51 : vector<8x128xf32>
    %c0_49 = arith.constant 0 : index
    %c0_50 = arith.constant 0 : index
    %53 = vector.load %arg20[%c0_49, %c0_50] : memref<8x128xf32, #tpu.memory_space<vmem>>, vector<8x128xf32>
    tpu.vector_store %arg20[%c0_49, %c0_50], %52 {strides = array<i32>} : memref<8x128xf32, #tpu.memory_space<vmem>>, vector<8x128xf32>,
    return
  }
  func.func @transform_0(%arg0: i32) -> (i32, i32) {
    %c0_i32 = arith.constant 0 : i32
    %c0_i32_0 = arith.constant 0 : i32
    return %arg0, %c0_i32 : i32, i32
  }
  func.func @transform_1(%arg0: i32) -> (i32, i32) {
    %c0_i32 = arith.constant 0 : i32
    %c0_i32_0 = arith.constant 0 : i32
    return %arg0, %c0_i32 : i32, i32
  }
  func.func @transform_2(%arg0: i32) -> (i32, i32) {
    %c0_i32 = arith.constant 0 : i32
    %c0_i32_0 = arith.constant 0 : i32
    return %arg0, %c0_i32 : i32, i32
  }
  func.func @transform_3(%arg0: i32) -> (i32, i32) {
    %c0_i32 = arith.constant 0 : i32
    %c0_i32_0 = arith.constant 0 : i32
    %c0_i32_1 = arith.constant 0 : i32
    return %c0_i32, %c0_i32_0 : i32, i32
  }
  func.func @transform_4(%arg0: i32) -> (i32, i32) {
    %c0_i32 = arith.constant 0 : i32
    %c0_i32_0 = arith.constant 0 : i32
    %c0_i32_1 = arith.constant 0 : i32
    return %c0_i32, %c0_i32_0 : i32, i32
  }
  func.func @transform_5(%arg0: i32) -> (i32, i32) {
    %c0_i32 = arith.constant 0 : i32
    %c0_i32_0 = arith.constant 0 : i32
    %c0_i32_1 = arith.constant 0 : i32
    return %c0_i32, %c0_i32_0 : i32, i32
  }
  func.func @transform_6(%arg0: i32) -> (i32, i32) {
    %c0_i32 = arith.constant 0 : i32
    %c0_i32_0 = arith.constant 0 : i32
    %c0_i32_1 = arith.constant 0 : i32
    return %c0_i32, %c0_i32_0 : i32, i32
  }
  func.func @transform_7(%arg0: i32) -> (i32, i32) {
    %c0_i32 = arith.constant 0 : i32
    %c0_i32_0 = arith.constant 0 : i32
    %c0_i32_1 = arith.constant 0 : i32
    return %c0_i32, %c0_i32_0 : i32, i32
  }
  func.func @transform_8(%arg0: i32) -> (i32, i32) {
    %c0_i32 = arith.constant 0 : i32
    %c0_i32_0 = arith.constant 0 : i32
    %c0_i32_1 = arith.constant 0 : i32
    return %c0_i32, %c0_i32_0 : i32, i32
  }
  func.func @transform_9(%arg0: i32) -> (i32, i32) {
    %c0_i32 = arith.constant 0 : i32
    %c0_i32_0 = arith.constant 0 : i32
    %c0_i32_1 = arith.constant 0 : i32
    return %c0_i32, %c0_i32_0 : i32, i32
  }
  func.func @transform_10(%arg0: i32) -> (i32, i32) {
    %c0_i32 = arith.constant 0 : i32
    %c0_i32_0 = arith.constant 0 : i32
    %c0_i32_1 = arith.constant 0 : i32
    return %c0_i32, %c0_i32_0 : i32, i32
  }
  func.func @transform_11(%arg0: i32) -> (i32, i32) {
    %c0_i32 = arith.constant 0 : i32
    %c0_i32_0 = arith.constant 0 : i32
    %c0_i32_1 = arith.constant 0 : i32
    return %c0_i32, %c0_i32_0 : i32, i32
  }
  func.func @transform_12(%arg0: i32) -> (i32, i32) {
    %c0_i32 = arith.constant 0 : i32
    %c0_i32_0 = arith.constant 0 : i32
    %c0_i32_1 = arith.constant 0 : i32
    return %c0_i32, %c0_i32_0 : i32, i32
  }
  func.func @transform_13(%arg0: i32) -> (i32, i32) {
    %c0_i32 = arith.constant 0 : i32
    %c0_i32_0 = arith.constant 0 : i32
    %c0_i32_1 = arith.constant 0 : i32
    return %c0_i32, %c0_i32_0 : i32, i32
  }
  func.func @transform_14(%arg0: i32) -> (i32, i32) {
    %c0_i32 = arith.constant 0 : i32
    %c0_i32_0 = arith.constant 0 : i32
    %c0_i32_1 = arith.constant 0 : i32
    return %c0_i32, %c0_i32_0 : i32, i32
  }
  func.func @transform_15(%arg0: i32) -> (i32, i32) {
    %c0_i32 = arith.constant 0 : i32
    %c0_i32_0 = arith.constant 0 : i32
    %c0_i32_1 = arith.constant 0 : i32
    return %c0_i32, %c0_i32_0 : i32, i32
  }
  func.func @transform_16(%arg0: i32) -> (i32, i32) {
    %c0_i32 = arith.constant 0 : i32
    %c0_i32_0 = arith.constant 0 : i32
    %c0_i32_1 = arith.constant 0 : i32
    return %c0_i32, %c0_i32_0 : i32, i32
  }
  func.func @transform_17(%arg0: i32) -> (i32, i32) {
    %c0_i32 = arith.constant 0 : i32
    %c0_i32_0 = arith.constant 0 : i32
    %c0_i32_1 = arith.constant 0 : i32
    return %c0_i32, %c0_i32_0 : i32, i32
  }
  func.func @transform_18(%arg0: i32) -> (i32, i32) {
    %c0_i32 = arith.constant 0 : i32
    %c0_i32_0 = arith.constant 0 : i32
    %c0_i32_1 = arith.constant 0 : i32
    return %c0_i32, %c0_i32_0 : i32, i32
  }
  func.func @transform_19(%arg0: i32) -> (i32, i32) {
    %c0_i32 = arith.constant 0 : i32
    %c0_i32_0 = arith.constant 0 : i32
    return %arg0, %c0_i32 : i32, i32
  }
}

</mosaic_0001>

<bundles_post_ra>
// kernel: tpu_custom_call.1
= control target key start
LH: loop header
LB: loop body
LE: loop exit
PB: predicated region body
PF: predicated region fallthrough
CT: control target
= control target key end

     0   :  { %s3059_s0 = inlined_call_operand.hbm [shape: f32[8,32], index: 0, kind: input, shape index: {}]   ;;  %s3060_s1 = inlined_call_operand.vmem [shape: f32[8,160], index: 1, kind: input, shape index: {}]   ;;  %s3061_s2 = inlined_call_operand.hbm [shape: f32[8,8], index: 2, kind: input, shape index: {}]   ;;  %s3062_s3 = inlined_call_operand.hbm [shape: f32[8,64], index: 3, kind: input, shape index: {}]   ;;  %s3063_s4 = inlined_call_operand.vmem [shape: f32[1,64], index: 4, kind: input, shape index: {}]   ;;  %s3064_s5 = inlined_call_operand.hbm [shape: f32[1,64], index: 5, kind: input, shape index: {}]   ;;  %s3065_s6 = inlined_call_operand.hbm [shape: f32[32,32], index: 6, kind: input, shape index: {}]   ;;  %s3066_s7 = inlined_call_operand.hbm [shape: f32[1,32], index: 7, kind: input, shape index: {}]   ;;  %s3067_s8 = inlined_call_operand.vmem [shape: f32[160,128], index: 8, kind: input, shape index: {}]   ;;  %s3068_s9 = inlined_call_operand.hbm [shape: f32[64,128], index: 9, kind: input, shape index: {}]   ;;  %s3069_s10 = inlined_call_operand.hbm [shape: f32[32,128], index: 10, kind: input, shape index: {}]   ;;  %s3070_s11 = inlined_call_operand.hbm [shape: f32[128,128], index: 11, kind: input, shape index: {}]   ;;  %s3071_s12 = inlined_call_operand.hbm [shape: f32[128,128], index: 12, kind: input, shape index: {}]   ;;  %s3072_s13 = inlined_call_operand.vmem [shape: f32[128,32], index: 13, kind: input, shape index: {}]   ;;  %s3073_s14 = inlined_call_operand.hbm [shape: f32[32,512], index: 14, kind: input, shape index: {}]   ;;  %s3074_s15 = inlined_call_operand.hbm [shape: f32[32,512], index: 15, kind: input, shape index: {}]   ;;  %s3075_s16 = inlined_call_operand.vmem [shape: f32[1,512], index: 16, kind: input, shape index: {}]   ;;  %s3076_s17 = inlined_call_operand.hbm [shape: f32[512,128], index: 17, kind: input, shape index: {}]   ;;  %s3077_s18 = inlined_call_operand.vmem [shape: f32[1,128], index: 18, kind: input, shape index: {}]   ;;  %s3078_s19 = inlined_call_operand.hbm [shape: f32[8,128], index: 19, kind: output, shape index: {}]  }
   0x1   :  { %3083 = sst [smem:[#allocation32_spill]] %s3059_s0 }
   0x2   :  { %3084 = sst [smem:[#allocation33_spill]] %s3060_s1 }
   0x3   :  { %3085 = sst [smem:[#allocation34_spill]] %s3061_s2 }
   0x4   :  { %3086 = sst [smem:[#allocation35_spill]] %s3062_s3 }
   0x5   :  { %24 = vsyncpa [#allocation3], 0 }
   0x6   :  { %25 = vsyncpa [#allocation6], 0 }
   0x7   :  { %26 = vsyncpa [#allocation9], 0 }
   0x8   :  { %27 = vsyncpa [#allocation12], 0 }
   0x9   :  { %28 = vsyncpa [#allocation15], 0 }
   0xa   :  { %29 = vsyncpa [#allocation18], 0 }
   0xb   :  { %30 = vsyncpa [#allocation21], 0 }
   0xc   :  { %31 = vsyncpa [#allocation4], 0  ;;  %s2514_s0 = smov [#allocation5]   ;;  %s2515_s20 = smov [#allocation8]  }
   0xd   :  { %s50_s30 = sshll.u32 %s2514_s0, 4  ;;  %s72_s21 = sshll.u32 %s2515_s20, 4  ;;  %s51_s30 = int_to_ptr.vmem [resolvable:$true] %s50_s30  ;;  %s73_s21 = int_to_ptr.vmem [resolvable:$true] %s72_s21 }
   0xe   :  { %s3087_s2 = sld [smem:[#allocation34_spill]] }
  0x14   :  { %s2190_s23 = scalar_lea.hbm %s3087_s2, 128 }
  0x15   :  { %p2191_p0 = scmp.ne.s32.totalorder %s3087_s2, %s2190_s23  ;;  %p2194_p1 = scmp.lt.u32.totalorder %s2190_s23, %s3087_s2 }
  0x17   :  { %p2196_p2 = pnand %p2194_p1, %p2191_p0 }
  0x19   :  { %2199 = shalt.err (!%p2196_p2)
}
  0x1a   :  { %s2200_s27 = scalar_lea.vmem %s51_s30, 128  ;;  %p2205_p4 = scmp.lt.s32.totalorder %s51_s30, %s51_s30 }
  0x1b   :  { %p2201_p3 = scmp.ne.s32.totalorder %s51_s30, %s2200_s27  ;;  %p2206_p5 = scmp.lt.s32.totalorder %s2200_s27, %s2200_s27 }
  0x1d   :  { %p2207_p6 = por %p2206_p5, %p2205_p4 }
  0x1f   :  { %p2208_p7 = pnand %p2207_p6, %p2201_p3 }
  0x21   :  { %2211 = shalt.err (!%p2208_p7)
}
  0x22   :  { %53 = dma.hbm_to_vmem [thread:$0]  %s3087_s2, 128, %s51_s30, [#allocation6]  }
  0x23   :  { %s2212_s1 = scalar_lea.hbm %s3064_s5, 16 }
  0x24   :  { %p2213_p8 = scmp.ne.s32.totalorder %s3064_s5, %s2212_s1  ;;  %p2216_p9 = scmp.lt.u32.totalorder %s2212_s1, %s3064_s5 }
  0x26   :  { %p2218_p10 = pnand %p2216_p9, %p2213_p8 }
  0x28   :  { %2221 = shalt.err (!%p2218_p10)
}
  0x29   :  { %s2222_s3 = scalar_lea.vmem %s73_s21, 16  ;;  %s2226_s26 = scalar_lea.vmem %s73_s21, 32 }
  0x2a   :  { %p2223_p11 = scmp.ne.s32.totalorder %s73_s21, %s2222_s3  ;;  %p2227_p12 = scmp.lt.s32.totalorder %s73_s21, %s73_s21 }
  0x2b   :  { %p2228_p13 = scmp.lt.s32.totalorder %s2226_s26, %s2222_s3 }
  0x2d   :  { %p2229_p0 = por %p2228_p13, %p2227_p12 }
  0x2f   :  { %p2230_p1 = pnand %p2229_p0, %p2223_p11 }
  0x31   :  { %2233 = shalt.err (!%p2230_p1)
}
  0x32   :  { %75 = dma.hbm_to_vmem [thread:$0]  %s3064_s5, 16, %s73_s21, [#allocation9]  }
  0x33   :  { %s2516_s27 = smov [#allocation11]   ;;  %s2234_s20 = scalar_lea.hbm %s3066_s7, 16 }
  0x34   :  { %s94_s28 = sshll.u32 %s2516_s27, 4  ;;  %p2235_p2 = scmp.ne.s32.totalorder %s3066_s7, %s2234_s20  ;;  %s95_s28 = int_to_ptr.vmem [resolvable:$true] %s94_s28 }
  0x35   :  { %p2238_p3 = scmp.lt.u32.totalorder %s2234_s20, %s3066_s7 }
  0x37   :  { %p2240_p4 = pnand %p2238_p3, %p2235_p2 }
  0x39   :  { %2243 = shalt.err (!%p2240_p4)
}
  0x3a   :  { %s2244_s25 = scalar_lea.vmem %s95_s28, 16  ;;  %s2248_s5 = scalar_lea.vmem %s95_s28, 32 }
  0x3b   :  { %p2245_p5 = scmp.ne.s32.totalorder %s95_s28, %s2244_s25  ;;  %p2249_p6 = scmp.lt.s32.totalorder %s95_s28, %s95_s28 }
  0x3c   :  { %p2250_p7 = scmp.lt.s32.totalorder %s2248_s5, %s2244_s25 }
  0x3e   :  { %p2251_p8 = por %p2250_p7, %p2249_p6 }
  0x40   :  { %p2252_p9 = pnand %p2251_p8, %p2245_p5 }
  0x42   :  { %2255 = shalt.err (!%p2252_p9)
}
  0x43   :  { %97 = dma.hbm_to_vmem [thread:$0]  %s3066_s7, 16, %s95_s28, [#allocation12]  }
  0x44   :  { %s2517_s26 = smov [#allocation14]   ;;  %s2518_s2 = smov [#allocation17]  }
  0x45   :  { %s117_s30 = sshll.u32 %s2517_s26, 4  ;;  %s141_s27 = sshll.u32 %s2518_s2, 4  ;;  %s118_s30 = int_to_ptr.vmem [resolvable:$true] %s117_s30  ;;  %s142_s27 = int_to_ptr.vmem [resolvable:$true] %s141_s27 }
  0x46   :  { %s2256_s20 = scalar_lea.hbm %s3069_s10, 512 }
  0x47   :  { %p2257_p10 = scmp.ne.s32.totalorder %s3069_s10, %s2256_s20  ;;  %p2260_p11 = scmp.lt.u32.totalorder %s2256_s20, %s3069_s10 }
  0x49   :  { %p2262_p12 = pnand %p2260_p11, %p2257_p10 }
  0x4b   :  { %2265 = shalt.err (!%p2262_p12)
}
  0x4c   :  { %s2266_s7 = scalar_lea.vmem %s118_s30, 512  ;;  %p2271_p0 = scmp.lt.s32.totalorder %s118_s30, %s118_s30 }
  0x4d   :  { %p2267_p13 = scmp.ne.s32.totalorder %s118_s30, %s2266_s7  ;;  %p2272_p1 = scmp.lt.s32.totalorder %s2266_s7, %s2266_s7 }
  0x4f   :  { %p2273_p2 = por %p2272_p1, %p2271_p0 }
  0x51   :  { %p2274_p3 = pnand %p2273_p2, %p2267_p13 }
  0x53   :  { %2277 = shalt.err (!%p2274_p3)
}
  0x54   :  { %s2519_s28 = smov 128   ;;  %s2520_s25 = smov 8  }
  0x55   :  { %123 = dma.hbm_to_vmem [thread:$0]  %s3069_s10, 512, %s118_s30, [#allocation15], %s2519_s28, %s2519_s28, %s2520_s25  }
  0x56   :  { %s2278_s2 = scalar_lea.hbm %s3071_s12, 2048 }
  0x57   :  { %p2279_p4 = scmp.ne.s32.totalorder %s3071_s12, %s2278_s2  ;;  %p2282_p5 = scmp.lt.u32.totalorder %s2278_s2, %s3071_s12 }
  0x59   :  { %p2284_p6 = pnand %p2282_p5, %p2279_p4 }
  0x5b   :  { %2287 = shalt.err (!%p2284_p6)
}
  0x5c   :  { %s2288_s22 = scalar_lea.vmem %s142_s27, 2048  ;;  %p2293_p8 = scmp.lt.s32.totalorder %s142_s27, %s142_s27 }
  0x5d   :  { %p2289_p7 = scmp.ne.s32.totalorder %s142_s27, %s2288_s22  ;;  %p2294_p9 = scmp.lt.s32.totalorder %s2288_s22, %s2288_s22 }
  0x5f   :  { %p2295_p10 = por %p2294_p9, %p2293_p8 }
  0x61   :  { %p2296_p11 = pnand %p2295_p10, %p2289_p7 }
  0x63   :  { %2299 = shalt.err (!%p2296_p11)
}
  0x64   :  { %147 = dma.hbm_to_vmem [thread:$0]  %s3071_s12, 2048, %s142_s27, [#allocation18], %s2519_s28, %s2519_s28, %s2520_s25  }
  0x65   :  { %s2521_s24 = smov [#allocation20]   ;;  %s2522_s7 = smov [#allocation2]  }
  0x66   :  { %s167_s23 = sshll.u32 %s2521_s24, 4  ;;  %s38_s5 = sshll.u32 %s2522_s7, 4  ;;  %s168_s23 = int_to_ptr.vmem [resolvable:$true] %s167_s23  ;;  %s39_s5 = int_to_ptr.vmem [resolvable:$true] %s38_s5 }
  0x67   :  { %s2300_s26 = scalar_lea.hbm %s3074_s15, 2048 }
  0x68   :  { %p2301_p12 = scmp.ne.s32.totalorder %s3074_s15, %s2300_s26  ;;  %p2304_p13 = scmp.lt.u32.totalorder %s2300_s26, %s3074_s15 }
  0x6a   :  { %p2306_p0 = pnand %p2304_p13, %p2301_p12 }
  0x6c   :  { %2309 = shalt.err (!%p2306_p0)
}
  0x6d   :  { %s2310_s12 = scalar_lea.vmem %s168_s23, 2048  ;;  %p2315_p2 = scmp.lt.s32.totalorder %s168_s23, %s168_s23 }
  0x6e   :  { %p2311_p1 = scmp.ne.s32.totalorder %s168_s23, %s2310_s12  ;;  %p2316_p3 = scmp.lt.s32.totalorder %s2310_s12, %s2310_s12 }
  0x70   :  { %p2317_p4 = por %p2316_p3, %p2315_p2 }
  0x72   :  { %p2318_p5 = pnand %p2317_p4, %p2311_p1 }
  0x74   :  { %2321 = shalt.err (!%p2318_p5)
}
  0x75   :  { %s2523_s27 = smov 512   ;;  %s2524_s1 = smov 32  }
  0x76   :  { %173 = dma.hbm_to_vmem [thread:$0]  %s3074_s15, 2048, %s168_s23, [#allocation21], %s2523_s27, %s2523_s27, %s2524_s1  }
  0x77   :  { %s3088_s7 = sld [smem:[#allocation32_spill]] }
  0x7d   :  { %s2322_s21 = scalar_lea.hbm %s3088_s7, 128 }
  0x7e   :  { %p2323_p6 = scmp.ne.s32.totalorder %s3088_s7, %s2322_s21  ;;  %p2326_p7 = scmp.lt.u32.totalorder %s2322_s21, %s3088_s7 }
  0x80   :  { %p2328_p8 = pnand %p2326_p7, %p2323_p6 }
  0x82   :  { %2331 = shalt.err (!%p2328_p8)
}
  0x83   :  { %s2332_s0 = scalar_lea.vmem %s39_s5, 128  ;;  %p2337_p10 = scmp.lt.s32.totalorder %s39_s5, %s39_s5 }
  0x84   :  { %p2333_p9 = scmp.ne.s32.totalorder %s39_s5, %s2332_s0  ;;  %p2338_p11 = scmp.lt.s32.totalorder %s2332_s0, %s2332_s0 }
  0x86   :  { %p2339_p12 = por %p2338_p11, %p2337_p10 }
  0x88   :  { %p2340_p13 = pnand %p2339_p12, %p2333_p9 }
  0x8a   :  { %2343 = shalt.err (!%p2340_p13)
}
  0x8b   :  { %41 = dma.hbm_to_vmem [thread:$0]  %s3088_s7, 128, %s39_s5, [#allocation3]  }
  0x8c   :  { %s2525_s20 = smov [#allocation7]   ;;  %s2526_s22 = smov [#allocation10]  }
  0x8d   :  { %s60_s12 = sshll.u32 %s2525_s20, 4  ;;  %s81_s10 = sshll.u32 %s2526_s22, 4  ;;  %s61_s12 = int_to_ptr.vmem [resolvable:$true] %s60_s12  ;;  %s82_s10 = int_to_ptr.vmem [resolvable:$true] %s81_s10 }
  0x8e   :  { %s3089_s21 = sld [smem:[#allocation35_spill]] }
  0x94   :  { %s2344_s3 = scalar_lea.hbm %s3089_s21, 128 }
  0x95   :  { %p2345_p0 = scmp.ne.s32.totalorder %s3089_s21, %s2344_s3  ;;  %p2348_p1 = scmp.lt.u32.totalorder %s2344_s3, %s3089_s21 }
  0x97   :  { %p2350_p2 = pnand %p2348_p1, %p2345_p0 }
  0x99   :  { %2353 = shalt.err (!%p2350_p2)
}
  0x9a   :  { %s2354_s5 = scalar_lea.vmem %s61_s12, 128  ;;  %p2359_p4 = scmp.lt.s32.totalorder %s61_s12, %s61_s12 }
  0x9b   :  { %p2355_p3 = scmp.ne.s32.totalorder %s61_s12, %s2354_s5  ;;  %p2360_p5 = scmp.lt.s32.totalorder %s2354_s5, %s2354_s5 }
  0x9d   :  { %p2361_p6 = por %p2360_p5, %p2359_p4 }
  0x9f   :  { %p2362_p7 = pnand %p2361_p6, %p2355_p3 }
  0xa1   :  { %2365 = shalt.err (!%p2362_p7)
}
  0xa2   :  { %63 = dma.hbm_to_vmem [thread:$0]  %s3089_s21, 128, %s61_s12, [#allocation6]  }
  0xa3   :  { %s2366_s22 = scalar_lea.hbm %s3065_s6, 512 }
  0xa4   :  { %p2367_p8 = scmp.ne.s32.totalorder %s3065_s6, %s2366_s22  ;;  %p2370_p9 = scmp.lt.u32.totalorder %s2366_s22, %s3065_s6 }
  0xa6   :  { %p2372_p10 = pnand %p2370_p9, %p2367_p8 }
  0xa8   :  { %2375 = shalt.err (!%p2372_p10)
}
  0xa9   :  { %s2376_s2 = scalar_lea.vmem %s82_s10, 512  ;;  %p2381_p12 = scmp.lt.s32.totalorder %s82_s10, %s82_s10 }
  0xaa   :  { %p2377_p11 = scmp.ne.s32.totalorder %s82_s10, %s2376_s2  ;;  %p2382_p13 = scmp.lt.s32.totalorder %s2376_s2, %s2376_s2 }
  0xac   :  { %p2383_p0 = por %p2382_p13, %p2381_p12 }
  0xae   :  { %p2384_p1 = pnand %p2383_p0, %p2377_p11 }
  0xb0   :  { %2387 = shalt.err (!%p2384_p1)
}
  0xb1   :  { %87 = dma.hbm_to_vmem [thread:$0]  %s3065_s6, 512, %s82_s10, [#allocation9], %s2519_s28, %s2519_s28, %s2520_s25  }
  0xb2   :  { %s2527_s29 = smov [#allocation13]   ;;  %s2528_s5 = smov [#allocation16]  }
  0xb3   :  { %s105_s0 = sshll.u32 %s2527_s29, 4  ;;  %s129_s7 = sshll.u32 %s2528_s5, 4  ;;  %s106_s0 = int_to_ptr.vmem [resolvable:$true] %s105_s0  ;;  %s130_s7 = int_to_ptr.vmem [resolvable:$true] %s129_s7 }
  0xb4   :  { %s2388_s20 = scalar_lea.hbm %s3068_s9, 1024 }
  0xb5   :  { %p2389_p2 = scmp.ne.s32.totalorder %s3068_s9, %s2388_s20  ;;  %p2392_p3 = scmp.lt.u32.totalorder %s2388_s20, %s3068_s9 }
  0xb7   :  { %p2394_p4 = pnand %p2392_p3, %p2389_p2 }
  0xb9   :  { %2397 = shalt.err (!%p2394_p4)
}
  0xba   :  { %s2398_s6 = scalar_lea.vmem %s106_s0, 1024  ;;  %p2403_p6 = scmp.lt.s32.totalorder %s106_s0, %s106_s0 }
  0xbb   :  { %p2399_p5 = scmp.ne.s32.totalorder %s106_s0, %s2398_s6  ;;  %p2404_p7 = scmp.lt.s32.totalorder %s2398_s6, %s2398_s6 }
  0xbd   :  { %p2405_p8 = por %p2404_p7, %p2403_p6 }
  0xbf   :  { %p2406_p9 = pnand %p2405_p8, %p2399_p5 }
  0xc1   :  { %2409 = shalt.err (!%p2406_p9)
}
  0xc2   :  { %111 = dma.hbm_to_vmem [thread:$0]  %s3068_s9, 1024, %s106_s0, [#allocation12], %s2519_s28, %s2519_s28, %s2520_s25  }
  0xc3   :  { %s2410_s21 = scalar_lea.hbm %s3070_s11, 2048 }
  0xc4   :  { %p2411_p10 = scmp.ne.s32.totalorder %s3070_s11, %s2410_s21  ;;  %p2414_p11 = scmp.lt.u32.totalorder %s2410_s21, %s3070_s11 }
  0xc6   :  { %p2416_p12 = pnand %p2414_p11, %p2411_p10 }
  0xc8   :  { %2419 = shalt.err (!%p2416_p12)
}
  0xc9   :  { %s2420_s20 = scalar_lea.vmem %s130_s7, 2048  ;;  %p2425_p0 = scmp.lt.s32.totalorder %s130_s7, %s130_s7 }
  0xca   :  { %p2421_p13 = scmp.ne.s32.totalorder %s130_s7, %s2420_s20  ;;  %p2426_p1 = scmp.lt.s32.totalorder %s2420_s20, %s2420_s20 }
  0xcc   :  { %p2427_p2 = por %p2426_p1, %p2425_p0 }
  0xce   :  { %p2428_p3 = pnand %p2427_p2, %p2421_p13 }
  0xd0   :  { %2431 = shalt.err (!%p2428_p3)
}
  0xd1   :  { %135 = dma.hbm_to_vmem [thread:$0]  %s3070_s11, 2048, %s130_s7, [#allocation15], %s2519_s28, %s2519_s28, %s2520_s25  }
  0xd2   :  { %s2529_s22 = smov [#allocation19]   ;;  %s2530_s24 = smov [#allocation22]  }
  0xd3   :  { %s155_s30 = sshll.u32 %s2529_s22, 4  ;;  %s181_s3 = sshll.u32 %s2530_s24, 4  ;;  %s156_s30 = int_to_ptr.vmem [resolvable:$true] %s155_s30  ;;  %s182_s3 = int_to_ptr.vmem [resolvable:$true] %s181_s3 }
  0xd4   :  { %s2432_s26 = scalar_lea.hbm %s3073_s14, 2048 }
  0xd5   :  { %p2433_p4 = scmp.ne.s32.totalorder %s3073_s14, %s2432_s26  ;;  %p2436_p5 = scmp.lt.u32.totalorder %s2432_s26, %s3073_s14 }
  0xd7   :  { %p2438_p6 = pnand %p2436_p5, %p2433_p4 }
  0xd9   :  { %2441 = shalt.err (!%p2438_p6)
}
  0xda   :  { %s2442_s11 = scalar_lea.vmem %s156_s30, 2048  ;;  %p2447_p8 = scmp.lt.s32.totalorder %s156_s30, %s156_s30 }
  0xdb   :  { %p2443_p7 = scmp.ne.s32.totalorder %s156_s30, %s2442_s11  ;;  %p2448_p9 = scmp.lt.s32.totalorder %s2442_s11, %s2442_s11 }
  0xdd   :  { %p2449_p10 = por %p2448_p9, %p2447_p8 }
  0xdf   :  { %p2450_p11 = pnand %p2449_p10, %p2443_p7 }
  0xe1   :  { %2453 = shalt.err (!%p2450_p11)
}
  0xe2   :  { %161 = dma.hbm_to_vmem [thread:$0]  %s3073_s14, 2048, %s156_s30, [#allocation18], %s2523_s27, %s2523_s27, %s2524_s1  }
  0xe3   :  { %s2454_s20 = scalar_lea.hbm %s3076_s17, 8192 }
  0xe4   :  { %p2455_p12 = scmp.ne.s32.totalorder %s3076_s17, %s2454_s20  ;;  %p2458_p13 = scmp.lt.u32.totalorder %s2454_s20, %s3076_s17 }
  0xe6   :  { %p2460_p0 = pnand %p2458_p13, %p2455_p12 }
  0xe8   :  { %2463 = shalt.err (!%p2460_p0)
}
  0xe9   :  { %s2464_s6 = scalar_lea.vmem %s182_s3, 8192  ;;  %p2469_p2 = scmp.lt.s32.totalorder %s182_s3, %s182_s3 }
  0xea   :  { %p2465_p1 = scmp.ne.s32.totalorder %s182_s3, %s2464_s6  ;;  %p2470_p3 = scmp.lt.s32.totalorder %s2464_s6, %s2464_s6 }
  0xec   :  { %p2471_p4 = por %p2470_p3, %p2469_p2 }
  0xee   :  { %p2472_p5 = pnand %p2471_p4, %p2465_p1 }
  0xf0   :  { %2475 = shalt.err (!%p2472_p5)
}
  0xf1   :  { %187 = dma.hbm_to_vmem [thread:$0]  %s3076_s17, 8192, %s182_s3, [#allocation21], %s2519_s28, %s2519_s28, %s2520_s25  }
  0xf2   :  { %2498 = dma.done.wait [#allocation3], 128  }
  0xf3   :  { %2499 = vsyncadd [#allocation3], 4294967168 }
  0xf4   :  { %2500 = dma.done.wait [#allocation6], 256  }
  0xf5   :  { %2501 = vsyncadd [#allocation6], 4294967040 }
  0xf6   :  { %2502 = dma.done.wait [#allocation9], 528  }
  0xf7   :  { %2503 = vsyncadd [#allocation9], 4294966768 }
  0xf8   :  { %2504 = dma.done.wait [#allocation12], 1040  }
  0xf9   :  { %2505 = vsyncadd [#allocation12], 4294966256 }
  0xfa   :  { %2506 = dma.done.wait [#allocation15], 2560  }
  0xfb   :  { %2507 = vsyncadd [#allocation15], 4294964736 }
  0xfc   :  { %2508 = dma.done.wait [#allocation18], 4096  }
  0xfd   :  { %2509 = vsyncadd [#allocation18], 4294963200 }
  0xfe   :  { %2510 = dma.done.wait [#allocation21], 10240  }
  0xff   :  { %2511 = vsyncadd [#allocation21], 4294957056  ;;  %v2531_v0 = vmov 0.0|0.0   ;;  %vm2532_vm0 = vmmov 0   ;;  %v2533_v1 = vmov 0.0   ;;  %v233_v2 = vld [vmem:[#allocation10] sm:$0xff] }
 0x100   :  { %1923 = vmatprep.subr.bf16.mxu1 %v2531_v0  ;;  %1780 = vmatprep.mubr.msk.f32.mxu1 %vm2532_vm0, %v2533_v1  ;;  %v234_v3 = vld [vmem:[#allocation10 + $0x8] sm:$0xff]  ;;  %v235_v4 = vld [vmem:[#allocation10 + $0x10] sm:$0xff]  ;;  %v236_v6 = vld [vmem:[#allocation10 + $0x18] sm:$0xff]  ;;  %vm244_vm1 = vcmask 261120   ;;  %vm319_vm2 = vcmask 64512   ;;  %vm540_vm14 = vcmask 523264  }
 0x101   :  { %1971 = vmatprep.subr.bf16.mxu0 %v2531_v0  ;;  %1815 = vmatprep.mubr.msk.f32.mxu0 %vm2532_vm0, %v2533_v1  ;;  %v1924_v5 = vpack.c.bf16 %v234_v3, %v233_v2  ;;  %v687_v7 = vld [vmem:[#allocation14] sm:$0xff]  ;;  %v688_v8 = vld [vmem:[#allocation14 + $0x8] sm:$0xff]  ;;  %v1927_v9 = vpack.c.bf16 %v236_v6, %v235_v4  ;;  %v318_v12 = vld [vmem:[#allocation7] sm:$0xff]  ;;  %v2534_v49 = vmov 683565275   ;;  %s3090_s29 = sld [smem:[#allocation33_spill]] }
 0x102   :  { %v1972_v10 = vpack.c.bf16 %v688_v8, %v687_v7  ;;  %v2829_v11 = vld [vmem:[#allocation2] sm:$0xff]  ;;  %v232_v13 = vld [vmem:[#allocation5] sm:$0xff]  ;;  %v690_v15 = vld [vmem:[#allocation14 + $0x18] sm:$0xff]  ;;  %v2535_v51 = vmov 2475754826   ;;  %s2540_s28 = smov [#allocation23]  }
 0x103   :  { %1925 = vmatpush3.bf16.msra.mxu1 %v1924_v5  ;;  %v689_v14 = vld [vmem:[#allocation14 + $0x10] sm:$0xff]  ;;  %v532_v17 = vld [vmem:[#allocation13] sm:$0xff]  ;;  %v533_v18 = vld [vmem:[#allocation13 + $0x8] sm:$0xff]  ;;  %v2536_v54 = vmov 2131351028  }
 0x104   :  { %1926 = vmatprep.subr.bf16.mxu1 %v2531_v0  ;;  %1973 = vmatpush3.bf16.msra.mxu0 %v1972_v10  ;;  %v1975_v16 = vpack.c.bf16 %v690_v15, %v689_v14  ;;  %v534_v19 = vld [vmem:[#allocation13 + $0x10] sm:$0xff]  ;;  %v1930_v20 = vpack.c.bf16 %v533_v18, %v532_v17  ;;  %v535_v21 = vld [vmem:[#allocation13 + $0x18] sm:$0xff]  ;;  %v536_v23 = vld [vmem:[#allocation13 + $0x20] sm:$0xff]  ;;  %v2537_v57 = vmov 2102212464  }
 0x105   :  { %1974 = vmatprep.subr.bf16.mxu0 %v2531_v0  ;;  %v1933_v22 = vpack.c.bf16 %v535_v21, %v534_v19  ;;  %v537_v24 = vld [vmem:[#allocation13 + $0x28] sm:$0xff]  ;;  %v538_v26 = vld [vmem:[#allocation13 + $0x30] sm:$0xff]  ;;  %v539_v27 = vld [vmem:[#allocation13 + $0x38] sm:$0xff]  ;;  %v2538_v60 = vmov 920167782  }
 0x106   :  { %v1936_v25 = vpack.c.bf16 %v537_v24, %v536_v23  ;;  %v1939_v28 = vpack.c.bf16 %v539_v27, %v538_v26  ;;  %v1613_v29 = vld [vmem:[#allocation11] ss:$0 sm:$0xff]  ;;  %v1616_v33 = vld [vmem:[%s3063_s4] ss:$0 sm:$0xff]  ;;  %v1617_v35 = vld [vmem:[#allocation8] ss:$0 sm:$0xff] }
 0x107   :  { %1928 = vmatpush3.bf16.msra.mxu1 %v1927_v9  ;;  %v2539_v63 = vmov 1326507024   ;;  %s1598_s4 = sshll.u32 %s2540_s28, 4  ;;  %s1599_s4 = int_to_ptr.vmem [resolvable:$true] %s1598_s4 }
 0x108   :  { %1783 = vmatprep.subr.mxu1 %v2533_v1  ;;  %1976 = vmatpush3.bf16.msra.mxu0 %v1975_v16  ;;  %s2476_s25 = scalar_lea.vmem %s1599_s4, 128  ;;  %p2481_p7 = scmp.lt.s32.totalorder %s1599_s4, %s1599_s4 }
 0x109   :  { %1977 = vmatprep.subr.bf16.mxu0 %v2531_v0  ;;  %p2477_p6 = scmp.ne.s32.totalorder %s1599_s4, %s2476_s25  ;;  %p2482_p8 = scmp.lt.s32.totalorder %s2476_s25, %s2476_s25 }
 0x10a   :  { %1781 = vmatmul.mubr.msk.f32.vlgmr.msra.gmra.mrb[0].mxu1 %vm244_vm1, %v2829_v11 }
 0x10b   :  { %1784 = vmatpush3.msra.mxu1 %v318_v12  ;;  %1785 = vmatprep.mubr.msk.f32.mxu1 %vm2532_vm0, %v2533_v1  ;;  %p2483_p9 = por %p2482_p8, %p2481_p7 }
 0x10c   :  { %1929 = vmatprep.subr.bf16.mxu1 %v2531_v0 }
 0x10d   :  { %p2484_p10 = pnand %p2483_p9, %p2477_p6 }
 0x10e   :  { %1786 = vmatmul.mubr.msk.f32.vlgmr.msra.gmra.mrb[2].mxu1 %vm319_vm2, %v232_v13 }
 0x10f   :  { %1804 = vmatprep.mubr.msk.f32.mxu1 %vm2532_vm0, %v2533_v1  ;;  %1931 = vmatpush3.bf16.msra.mxu1 %v1930_v20 }
 0x110   :  { %1932 = vmatprep.subr.bf16.mxu1 %v2531_v0 }
 0x113   :  { %1934 = vmatpush3.bf16.msra.mxu1 %v1933_v22 }
 0x114   :  { %1935 = vmatprep.subr.bf16.mxu1 %v2531_v0 }
 0x117   :  { %1937 = vmatpush3.bf16.msra.mxu1 %v1936_v25 }
 0x118   :  { %1938 = vmatprep.subr.bf16.mxu1 %v2531_v0 }
 0x11b   :  { %1940 = vmatpush3.bf16.msra.mxu1 %v1939_v28 }
 0x11c   :  { %1941 = vmatprep.subr.bf16.mxu1 %v2531_v0 }
 0x1dd   :  { %v314_v30 = vpop.f32.mrb[0].mxu1 }
 0x1de   :  { %v315_v31 = vadd.f32 %v1613_v29, %v314_v30  ;;  %v1782_v32 = vpop.f32.mrb[1].mxu1 }
 0x1e0   :  { %1816 = vmatmul.mubr.msk.f32.vlgmr.msra.gmra.mrb[0].mxu0 %vm244_vm1, %v315_v31 }
 0x1e1   :  { %v389_v34 = vpop.f32.mrb[2].mxu1  ;;  %1850 = vmatprep.mubr.msk.f32.mxu0 %vm2532_vm0, %v2533_v1 }
 0x1e2   :  { %v400_v36 = vmul.f32 %v1616_v33, %v389_v34  ;;  %v1787_v37 = vpop.f32.mrb[3].mxu1 }
 0x1e4   :  { %v2850_v38 = vadd.f32 %v1617_v35, %v400_v36 }
 0x1e6   :  { %v412_v39 = vand.u32 2139095040, %v2850_v38  ;;  %v409_v43 = vand.u32 2147483647, %v2850_v38  ;;  %vm411_vm10 = vcmp.lt.s32.totalorder %v2850_v38, 0  ;;  %vm501_vm2 = vweird.f32 %v2850_v38 }
 0x1e8   :  { %v413_v40 = vshrl.u32 %v412_v39, 23  ;;  %v416_v46 = vand.u32 8388607, %v409_v43  ;;  %vm410_vm11 = vcmp.le.f32.partialorder %v409_v43, 0.7853982 }
 0x1ea   :  { %v1618_v41 = vadd.s32 4294967169, %v413_v40  ;;  %v417_v3 = vor.u32 8388608, %v416_v46 }
 0x1ec   :  { %v419_v42 = vadd.s32 1, %v1618_v41  ;;  %v457_v18 = vshll.u32 %v417_v3, 8  ;;  %v512_v3 = vld [vmem:[%s3067_s8] sm:$0xff] }
 0x1ee   :  { %vm420_vm3 = vcmp.gt.s32.totalorder %v419_v42, 0 }
 0x1ef   :  { %v421_v44 = vsel %vm420_vm3, %v419_v42, 0 }
 0x1f0   :  { %v423_v45 = vand.u32 31, %v421_v44  ;;  %v422_v48 = vshrl.u32 %v421_v44, 5 }
 0x1f2   :  { %v424_v47 = vsub.s32 32, %v423_v45  ;;  %v426_v50 = vshll.u32 %v2534_v49, %v423_v45  ;;  %v429_v52 = vshll.u32 %v2535_v51, %v423_v45  ;;  %v432_v56 = vshll.u32 %v2536_v54, %v423_v45 }
 0x1f3   :  { %v435_v59 = vshll.u32 %v2537_v57, %v423_v45  ;;  %v438_v62 = vshll.u32 %v2538_v60, %v423_v45  ;;  %vm441_vm4 = vcmp.lt.s32.totalorder %v422_v48, 1  ;;  %vm444_vm5 = vcmp.lt.s32.totalorder %v422_v48, 4 }
 0x1f4   :  { %v427_v53 = vshrl.u32 %v2535_v51, %v424_v47  ;;  %v430_v55 = vshrl.u32 %v2536_v54, %v424_v47  ;;  %v433_v58 = vshrl.u32 %v2537_v57, %v424_v47  ;;  %v436_v61 = vshrl.u32 %v2538_v60, %v424_v47 }
 0x1f5   :  { %v439_v2 = vshrl.u32 %v2539_v63, %v424_v47  ;;  %v425_v13 = vshrl.u32 %v2534_v49, %v424_v47  ;;  %vm443_vm6 = vcmp.lt.s32.totalorder %v422_v48, 3  ;;  %vm442_vm7 = vcmp.lt.s32.totalorder %v422_v48, 2 }
 0x1f6   :  { %v428_v4 = vor.u32 %v427_v53, %v426_v50  ;;  %v431_v5 = vor.u32 %v430_v55, %v429_v52  ;;  %v434_v6 = vor.u32 %v433_v58, %v432_v56  ;;  %v437_v7 = vor.u32 %v436_v61, %v435_v59 }
 0x1f7   :  { %v440_v8 = vor.u32 %v439_v2, %v438_v62 }
 0x1f8   :  { %v446_v9 = vsel %vm444_vm5, %v434_v6, 2102212464  ;;  %v449_v10 = vsel %vm441_vm4, %v428_v4, %v431_v5  ;;  %v453_v12 = vsel %vm441_vm4, %v431_v5, %v434_v6  ;;  %v450_v14 = vsel %vm444_vm5, %v437_v7, 920167782 }
 0x1f9   :  { %v454_v15 = vsel %vm444_vm5, %v440_v8, 1326507024  ;;  %v451_v16 = vsel %vm443_vm6, %v434_v6, %v450_v14  ;;  %v445_v19 = vsel %vm441_vm4, %v425_v13, %v428_v4  ;;  %v447_v20 = vsel %vm443_vm6, %v431_v5, %v446_v9  ;;  %v513_v4 = vld [vmem:[%s3067_s8 + $0x8] sm:$0xff]  ;;  %v765_v6 = vld [vmem:[#allocation16] sm:$0xff]  ;;  %v768_v13 = vld [vmem:[#allocation16 + $0x18] sm:$0xff] }
 0x1fa   :  { %v455_v17 = vsel %vm443_vm6, %v437_v7, %v454_v15  ;;  %v452_v21 = vsel %vm442_vm7, %v449_v10, %v451_v16  ;;  %v448_v27 = vsel %vm442_vm7, %v445_v19, %v447_v20  ;;  %v766_v7 = vld [vmem:[#allocation16 + $0x8] sm:$0xff]  ;;  %v767_v8 = vld [vmem:[#allocation16 + $0x10] sm:$0xff]  ;;  %v1942_v10 = vpack.c.bf16 %v513_v4, %v512_v3  ;;  %v515_v16 = vld [vmem:[%s3067_s8 + $0x18] sm:$0xff] }
 0x1fb   :  { %v456_v22 = vsel %vm442_vm7, %v453_v12, %v455_v17  ;;  %v2859_v25 = vmul.u32.u64.low %v457_v18, %v452_v21  ;;  %v2860_v26 = vmul.u32.u64.high %v457_v18, %v452_v21, %v2859_v25  ;;  %v464_v29 = vmul.u32 %v457_v18, %v448_v27  ;;  %v514_v15 = vld [vmem:[%s3067_s8 + $0x10] sm:$0xff]  ;;  %v231_v17 = vld [vmem:[%s3090_s29 + $0x8] sm:$0xff] }
 0x1fc   :  { %v2856_v23 = vmul.u32.u64.low %v457_v18, %v456_v22  ;;  %v2857_v24 = vmul.u32.u64.high %v457_v18, %v456_v22, %v2856_v23  ;;  %v1978_v12 = vpack.c.bf16 %v766_v7, %v765_v6  ;;  %v1981_v19 = vpack.c.bf16 %v768_v13, %v767_v8  ;;  %v770_v20 = vld [vmem:[#allocation16 + $0x28] sm:$0xff]  ;;  %v856_v7 = vld [vmem:[#allocation17] sm:$0xff] }
 0x1fd   :  { %v467_v28 = vadd.s32 1, %v2860_v26  ;;  %v1945_v21 = vpack.c.bf16 %v515_v16, %v514_v15  ;;  %v516_v22 = vld [vmem:[%s3067_s8 + $0x20] sm:$0xff]  ;;  %v517_v23 = vld [vmem:[%s3067_s8 + $0x28] sm:$0xff] }
 0x1fe   :  { %vm466_vm8 = vc.u32 %v2857_v24, %v2859_v25  ;;  %v465_v42 = vadd.s32 %v2859_v25, %v2857_v24  ;;  %1979 = vmatpush3.bf16.msra.mxu0 %v1978_v12  ;;  %v771_v25 = vld [vmem:[#allocation16 + $0x30] sm:$0xff]  ;;  %v1948_v27 = vpack.c.bf16 %v517_v23, %v516_v22  ;;  %v857_v8 = vld [vmem:[#allocation17 + $0x8] sm:$0xff]  ;;  %v859_v12 = vld [vmem:[#allocation17 + $0x18] sm:$0xff] }
 0x1ff   :  { %v468_v30 = vsel %vm466_vm8, %v467_v28, %v2860_v26  ;;  %1980 = vmatprep.subr.bf16.mxu0 %v2531_v0  ;;  %v772_v26 = vld [vmem:[#allocation16 + $0x38] sm:$0xff]  ;;  %v861_v15 = vld [vmem:[#allocation17 + $0x28] sm:$0xff] }
 0x200   :  { %v469_v31 = vadd.s32 %v468_v30, %v464_v29  ;;  %v518_v28 = vld [vmem:[%s3067_s8 + $0x30] sm:$0xff]  ;;  %v519_v29 = vld [vmem:[%s3067_s8 + $0x38] sm:$0xff]  ;;  %v1987_v30 = vpack.c.bf16 %v772_v26, %v771_v25  ;;  %v865_v22 = vld [vmem:[#allocation17 + $0x48] sm:$0xff] }
 0x201   :  { %v867_v25 = vld [vmem:[#allocation17 + $0x58] sm:$0xff] }
 0x202   :  { %v470_v32 = vadd.s32 536870912, %v469_v31  ;;  %1982 = vmatpush3.bf16.msra.mxu0 %v1981_v19 }
 0x203   :  { %1983 = vmatprep.subr.bf16.mxu0 %v2531_v0 }
 0x204   :  { %v471_v33 = vshrl.u32 %v470_v32, 30  ;;  %v774_v32 = vld [vmem:[#allocation16 + $0x48] sm:$0xff] }
 0x206   :  { %v472_v34 = vshll.u32 %v471_v33, 30  ;;  %v495_v57 = vsub.s32 4, %v471_v33 }
 0x208   :  { %v473_v35 = vsub.s32 %v469_v31, %v472_v34  ;;  %v496_v59 = vsel %vm411_vm10, %v495_v57, %v471_v33  ;;  %v773_v31 = vld [vmem:[#allocation16 + $0x40] sm:$0xff]  ;;  %v1951_v33 = vpack.c.bf16 %v519_v29, %v518_v28  ;;  %v869_v28 = vld [vmem:[#allocation17 + $0x68] sm:$0xff] }
 0x209   :  { %v498_v60 = vsel %vm410_vm11, 0, %v496_v59  ;;  %v520_v34 = vld [vmem:[%s3067_s8 + $0x40] sm:$0xff]  ;;  %v531_v59 = vld [vmem:[%s3067_s8 + $0x98] sm:$0xff] }
 0x20a   :  { %v475_v36 = vsub.s32 0, %v473_v35  ;;  %v502_v61 = vand.u32 3, %v498_v60 }
 0x20c   :  { %v1619_v37 = vmin.u32 %v475_v36, %v473_v35  ;;  %vm507_vm12 = vcmp.eq.s32.totalorder %v502_v61, 2  ;;  %vm504_vm13 = vcmp.eq.s32.totalorder %v502_v61, 0  ;;  %vm503_vm15 = vcmp.lt.s32.totalorder %v502_v61, 2  ;;  %v230_v61 = vld [vmem:[%s3090_s29] sm:$0xff] }
 0x20d   :  { %v1990_v36 = vpack.c.bf16 %v774_v32, %v773_v31  ;;  %v871_v31 = vld [vmem:[#allocation17 + $0x78] sm:$0xff] }
 0x20e   :  { %v477_v39 = vclz %v1619_v37  ;;  %v775_v37 = vld [vmem:[#allocation16 + $0x50] sm:$0xff] }
 0x210   :  { %v1620_v40 = vadd.s32 4294967294, %v477_v39  ;;  %v776_v39 = vld [vmem:[#allocation16 + $0x58] sm:$0xff] }
 0x212   :  { %vm1621_vm9 = vcmp.lt.s32.totalorder %v1620_v40, 0 }
 0x213   :  { %v480_v41 = vsel %vm1621_vm9, 0, %v1620_v40 }
 0x214   :  { %v481_v44 = vsub.s32 32, %v480_v41  ;;  %v485_v45 = vsub.s32 4294967266, %v480_v41  ;;  %v482_v46 = vshll.u32 %v473_v35, %v480_v41  ;;  %v521_v35 = vld [vmem:[%s3067_s8 + $0x48] sm:$0xff]  ;;  %v522_v41 = vld [vmem:[%s3067_s8 + $0x50] sm:$0xff] }
 0x215   :  { %v1954_v40 = vpack.c.bf16 %v521_v35, %v520_v34  ;;  %v946_v34 = vld [vmem:[%s3072_s13 + $0x8] sm:$0xff]  ;;  %v947_v35 = vld [vmem:[%s3072_s13 + $0x10] sm:$0xff] }
 0x216   :  { %v483_v47 = vshrl.u32 %v465_v42, %v481_v44  ;;  %v486_v48 = vadd.s32 127, %v485_v45  ;;  %v523_v42 = vld [vmem:[%s3067_s8 + $0x58] sm:$0xff]  ;;  %v1993_v44 = vpack.c.bf16 %v776_v39, %v775_v37 }
 0x217   :  { %v777_v45 = vld [vmem:[#allocation16 + $0x60] sm:$0xff] }
 0x218   :  { %v484_v49 = vor.u32 %v483_v47, %v482_v46  ;;  %v487_v50 = vshll.u32 %v486_v48, 23  ;;  %v778_v46 = vld [vmem:[#allocation16 + $0x68] sm:$0xff]  ;;  %v1957_v47 = vpack.c.bf16 %v523_v42, %v522_v41  ;;  %v948_v37 = vld [vmem:[%s3072_s13 + $0x18] sm:$0xff] }
 0x219   :  { %v524_v48 = vld [vmem:[%s3067_s8 + $0x60] sm:$0xff]  ;;  %v2029_v39 = vpack.c.bf16 %v948_v37, %v947_v35  ;;  %v950_v41 = vld [vmem:[%s3072_s13 + $0x28] sm:$0xff] }
 0x21a   :  { %v488_v51 = vor.u32 4788187, %v487_v50  ;;  %v491_v53 = vcvt.s32.f32 %v484_v49  ;;  %v525_v49 = vld [vmem:[%s3067_s8 + $0x68] sm:$0xff]  ;;  %v1996_v50 = vpack.c.bf16 %v778_v46, %v777_v45  ;;  %v952_v45 = vld [vmem:[%s3072_s13 + $0x38] sm:$0xff] }
 0x21c   :  { %v489_v52 = vand.u32 2147483647, %v488_v51  ;;  %v1960_v51 = vpack.c.bf16 %v525_v49, %v524_v48 }
 0x21e   :  { %v492_v54 = vmul.f32 %v491_v53, %v489_v52  ;;  %v526_v52 = vld [vmem:[%s3067_s8 + $0x70] sm:$0xff]  ;;  %v527_v53 = vld [vmem:[%s3067_s8 + $0x78] sm:$0xff] }
 0x220   :  { %v493_v55 = vxor.u32 2147483648, %v492_v54 }
 0x222   :  { %v494_v56 = vsel %vm411_vm10, %v493_v55, %v492_v54  ;;  %v1963_v54 = vpack.c.bf16 %v527_v53, %v526_v52  ;;  %v528_v55 = vld [vmem:[%s3067_s8 + $0x80] sm:$0xff]  ;;  %v954_v52 = vld [vmem:[%s3072_s13 + $0x48] sm:$0xff] }
 0x223   :  { %v497_v58 = vsel %vm410_vm11, %v2850_v38, %v494_v56  ;;  %v769_v38 = vld [vmem:[#allocation16 + $0x20] sm:$0xff]  ;;  %v529_v56 = vld [vmem:[%s3067_s8 + $0x88] sm:$0xff] }
 0x224   :  { %2182 = vcosq.f32 %v497_v58  ;;  %v1984_v24 = vpack.c.bf16 %v770_v20, %v769_v38  ;;  %v1966_v57 = vpack.c.bf16 %v529_v56, %v528_v55  ;;  %v956_v55 = vld [vmem:[%s3072_s13 + $0x58] sm:$0xff] }
 0x225   :  { %2184 = vsinq.f32 %v497_v58  ;;  %v530_v58 = vld [vmem:[%s3067_s8 + $0x90] sm:$0xff] }
 0x226   :  { %1985 = vmatpush3.bf16.msra.mxu0 %v1984_v24  ;;  %v1969_v60 = vpack.c.bf16 %v531_v59, %v530_v58  ;;  %v866_v24 = vld [vmem:[#allocation17 + $0x50] sm:$0xff] }
 0x227   :  { %1986 = vmatprep.subr.bf16.mxu0 %v2531_v0  ;;  %v2017_v26 = vpack.c.bf16 %v867_v25, %v866_v24  ;;  %v958_v58 = vld [vmem:[%s3072_s13 + $0x68] sm:$0xff] }
 0x228   :  { %v1036_v24 = vld [vmem:[#allocation19 + $0x28] sm:$0xff] }
 0x22a   :  { %1988 = vmatpush3.bf16.msra.mxu0 %v1987_v30  ;;  %v870_v30 = vld [vmem:[#allocation17 + $0x70] sm:$0xff] }
 0x22b   :  { %1989 = vmatprep.subr.bf16.mxu0 %v2531_v0  ;;  %v2023_v32 = vpack.c.bf16 %v871_v31, %v870_v30  ;;  %v1044_v30 = vld [vmem:[#allocation19 + $0x68] sm:$0xff] }
 0x22e   :  { %v2183_v62 = vpop.eup %2182  ;;  %1991 = vmatpush3.bf16.msra.mxu0 %v1990_v36 }
 0x22f   :  { %v2185_v63 = vpop.eup %2184  ;;  %v508_v2 = vxor.u32 2147483648, %v2183_v62  ;;  %1992 = vmatprep.subr.bf16.mxu0 %v2531_v0 }
 0x230   :  { %v505_v43 = vxor.u32 2147483648, %v2185_v63 }
 0x231   :  { %v509_v5 = vsel %vm507_vm12, %v508_v2, %v2185_v63  ;;  %v780_v63 = vld [vmem:[#allocation16 + $0x78] sm:$0xff] }
 0x232   :  { %v506_v9 = vsel %vm504_vm13, %v2183_v62, %v505_v43  ;;  %1994 = vmatpush3.bf16.msra.mxu0 %v1993_v44  ;;  %v779_v62 = vld [vmem:[#allocation16 + $0x70] sm:$0xff] }
 0x233   :  { %v510_v14 = vsel %vm503_vm15, %v506_v9, %v509_v5  ;;  %1995 = vmatprep.subr.bf16.mxu0 %v2531_v0  ;;  %v1999_v2 = vpack.c.bf16 %v780_v63, %v779_v62  ;;  %v858_v9 = vld [vmem:[#allocation17 + $0x10] sm:$0xff]  ;;  %v1048_v63 = vld [vmem:[#allocation20 + $0x8] sm:$0xff] }
 0x234   :  { %v511_v18 = vsel %vm501_vm2, nan, %v510_v14  ;;  %v2005_v13 = vpack.c.bf16 %v859_v12, %v858_v9  ;;  %v860_v14 = vld [vmem:[#allocation17 + $0x20] sm:$0xff]  ;;  %v951_v44 = vld [vmem:[%s3072_s13 + $0x30] sm:$0xff] }
 0x235   :  { %1805 = vmatmul.mubr.msk.f32.vlgmr.msra.gmra.mrb[4].mxu1 %vm540_vm14, %v511_v18  ;;  %v2008_v16 = vpack.c.bf16 %v861_v15, %v860_v14  ;;  %v863_v18 = vld [vmem:[#allocation17 + $0x38] sm:$0xff]  ;;  %v2035_v46 = vpack.c.bf16 %v952_v45, %v951_v44  ;;  %v1059_v12 = vld [vmem:[#allocation20 + $0x60] sm:$0xff] }
 0x236   :  { %1943 = vmatpush1.bf16.msra.mxu1 %v1942_v10  ;;  %1623 = vmatprep.mubr.msk.f32.mxu1 %vm244_vm1, %v231_v17  ;;  %v2002_v10 = vpack.c.bf16 %v857_v8, %v856_v7  ;;  %v862_v17 = vld [vmem:[#allocation17 + $0x30] sm:$0xff]  ;;  %v1060_v7 = vld [vmem:[#allocation20 + $0x68] sm:$0xff]  ;;  %v1054_v14 = vld [vmem:[#allocation20 + $0x38] sm:$0xff] }
 0x237   :  { %1944 = vmatprep.subr.bf16.mxu1 %v2531_v0  ;;  %1997 = vmatpush3.bf16.msra.mxu0 %v1996_v50  ;;  %v2011_v19 = vpack.c.bf16 %v863_v18, %v862_v17  ;;  %v1053_v17 = vld [vmem:[#allocation20 + $0x30] sm:$0xff]  ;;  %v1058_v18 = vld [vmem:[#allocation20 + $0x58] sm:$0xff] }
 0x238   :  { %1998 = vmatprep.subr.bf16.mxu0 %v2531_v0  ;;  %v1038_v44 = vld [vmem:[#allocation19 + $0x38] sm:$0xff] }
 0x23a   :  { %1946 = vmatpush1.bf16.msra.mxu1 %v1945_v21  ;;  %v864_v21 = vld [vmem:[#allocation17 + $0x40] sm:$0xff] }
 0x23b   :  { %1947 = vmatprep.subr.bf16.mxu1 %v2531_v0  ;;  %2000 = vmatpush3.bf16.msra.mxu0 %v1999_v2  ;;  %v2014_v23 = vpack.c.bf16 %v865_v22, %v864_v21  ;;  %v1052_v2 = vld [vmem:[#allocation20 + $0x28] sm:$0xff]  ;;  %v1057_v21 = vld [vmem:[#allocation20 + $0x50] sm:$0xff] }
 0x23c   :  { %2001 = vmatprep.subr.bf16.mxu0 %v2531_v0  ;;  %v1061_v22 = vld [vmem:[#allocation20 + $0x70] sm:$0xff] }
 0x23d   :  { %v2063_v25 = vpack.c.bf16 %v1061_v22, %v1057_v21  ;;  %v1037_v21 = vld [vmem:[#allocation19 + $0x30] sm:$0xff]  ;;  %v1042_v22 = vld [vmem:[#allocation19 + $0x58] sm:$0xff] }
 0x23e   :  { %1949 = vmatpush1.bf16.msra.mxu1 %v1948_v27  ;;  %v868_v27 = vld [vmem:[#allocation17 + $0x60] sm:$0xff] }
 0x23f   :  { %1950 = vmatprep.subr.bf16.mxu1 %v2531_v0  ;;  %v2020_v29 = vpack.c.bf16 %v869_v28, %v868_v27  ;;  %v1031_v27 = vld [vmem:[#allocation19] sm:$0xff] }
 0x240   :  { %v1035_v28 = vld [vmem:[#allocation19 + $0x20] sm:$0xff] }
 0x241   :  { %v2067_v31 = vpack.c.bf16 %v1035_v28, %v1031_v27  ;;  %v1045_v27 = vld [vmem:[#allocation19 + $0x70] sm:$0xff] }
 0x242   :  { %1952 = vmatpush1.bf16.msra.mxu1 %v1951_v33  ;;  %v945_v33 = vld [vmem:[%s3072_s13] sm:$0xff] }
 0x243   :  { %1953 = vmatprep.subr.bf16.mxu1 %v2531_v0  ;;  %v2026_v36 = vpack.c.bf16 %v946_v34, %v945_v33  ;;  %v1039_v33 = vld [vmem:[#allocation19 + $0x40] sm:$0xff] }
 0x244   :  { %v1043_v34 = vld [vmem:[#allocation19 + $0x60] sm:$0xff] }
 0x245   :  { %v2071_v35 = vpack.c.bf16 %v1043_v34, %v1039_v33  ;;  %v1412_v34 = vld [vmem:[#allocation22 + $0x100] sm:$0xff] }
 0x246   :  { %1955 = vmatpush1.bf16.msra.mxu1 %v1954_v40  ;;  %v949_v40 = vld [vmem:[%s3072_s13 + $0x20] sm:$0xff] }
 0x247   :  { %1956 = vmatprep.subr.bf16.mxu1 %v2531_v0  ;;  %v2032_v42 = vpack.c.bf16 %v950_v41, %v949_v40 }
 0x24a   :  { %1958 = vmatpush1.bf16.msra.mxu1 %v1957_v47 }
 0x24b   :  { %1959 = vmatprep.subr.bf16.mxu1 %v2531_v0 }
 0x24e   :  { %1961 = vmatpush1.bf16.msra.mxu1 %v1960_v51  ;;  %v953_v51 = vld [vmem:[%s3072_s13 + $0x40] sm:$0xff] }
 0x24f   :  { %1962 = vmatprep.subr.bf16.mxu1 %v2531_v0  ;;  %v2038_v53 = vpack.c.bf16 %v954_v52, %v953_v51  ;;  %v1398_v51 = vld [vmem:[#allocation22 + $0x90] sm:$0xff]  ;;  %v1399_v52 = vld [vmem:[#allocation22 + $0x98] sm:$0xff] }
 0x252   :  { %1964 = vmatpush1.bf16.msra.mxu1 %v1963_v54  ;;  %v955_v54 = vld [vmem:[%s3072_s13 + $0x50] sm:$0xff] }
 0x253   :  { %1965 = vmatprep.subr.bf16.mxu1 %v2531_v0  ;;  %v2041_v56 = vpack.c.bf16 %v956_v55, %v955_v54  ;;  %v2085_v54 = vpack.c.bf16 %v1399_v52, %v1398_v51  ;;  %v1382_v55 = vld [vmem:[#allocation22 + $0x10] sm:$0xff] }
 0x256   :  { %1967 = vmatpush1.bf16.msra.mxu1 %v1966_v57  ;;  %v957_v57 = vld [vmem:[%s3072_s13 + $0x60] sm:$0xff] }
 0x257   :  { %1968 = vmatprep.subr.bf16.mxu1 %v2531_v0  ;;  %v2044_v59 = vpack.c.bf16 %v958_v58, %v957_v57  ;;  %v1401_v57 = vld [vmem:[#allocation22 + $0xa8] sm:$0xff] }
 0x25a   :  { %1970 = vmatpush1.bf16.msra.mxu1 %v1969_v60  ;;  %v959_v60 = vld [vmem:[%s3072_s13 + $0x70] sm:$0xff] }
 0x25b   :  { %2025 = vmatprep.subr.bf16.mxu1 %v2531_v0 }
 0x25d   :  { %682 = vmatmul.mubr.f32.vlgmr.msra.gmra.mrb[4].mxu1 %v230_v61  ;;  %v960_v61 = vld [vmem:[%s3072_s13 + $0x78] sm:$0xff] }
 0x25e   :  { %1920 = vmatprep.mubr.msk.f32.mxu1 %vm2532_vm0, %v2533_v1  ;;  %2027 = vmatpush3.bf16.msra.mxu1 %v2026_v36  ;;  %v2047_v62 = vpack.c.bf16 %v960_v61, %v959_v60  ;;  %v1385_v60 = vld [vmem:[#allocation22 + $0x28] sm:$0xff]  ;;  %v1402_v61 = vld [vmem:[#allocation22 + $0xb0] sm:$0xff] }
 0x25f   :  { %2028 = vmatprep.subr.bf16.mxu1 %v2531_v0 }
 0x262   :  { %2030 = vmatpush3.bf16.msra.mxu1 %v2029_v39 }
 0x263   :  { %2031 = vmatprep.subr.bf16.mxu1 %v2531_v0 }
 0x266   :  { %2033 = vmatpush3.bf16.msra.mxu1 %v2032_v42  ;;  %v1034_v42 = vld [vmem:[#allocation19 + $0x18] sm:$0xff] }
 0x267   :  { %2034 = vmatprep.subr.bf16.mxu1 %v2531_v0  ;;  %v2073_v45 = vpack.c.bf16 %v1038_v44, %v1034_v42  ;;  %v1415_v42 = vld [vmem:[#allocation22 + $0x118] sm:$0xff]  ;;  %v1432_v44 = vld [vmem:[#allocation22 + $0x1a0] sm:$0xff] }
 0x26a   :  { %2036 = vmatpush3.bf16.msra.mxu1 %v2035_v46  ;;  %v1397_v46 = vld [vmem:[#allocation22 + $0x88] sm:$0xff] }
 0x26b   :  { %2037 = vmatprep.subr.bf16.mxu1 %v2531_v0 }
 0x26e   :  { %2039 = vmatpush3.bf16.msra.mxu1 %v2038_v53 }
 0x26f   :  { %2040 = vmatprep.subr.bf16.mxu1 %v2531_v0 }
 0x272   :  { %2042 = vmatpush3.bf16.msra.mxu1 %v2041_v56  ;;  %v1383_v56 = vld [vmem:[#allocation22 + $0x18] sm:$0xff] }
 0x273   :  { %2043 = vmatprep.subr.bf16.mxu1 %v2531_v0 }
 0x276   :  { %2045 = vmatpush3.bf16.msra.mxu1 %v2044_v59  ;;  %v1384_v59 = vld [vmem:[#allocation22 + $0x20] sm:$0xff] }
 0x277   :  { %2046 = vmatprep.subr.bf16.mxu1 %v2531_v0 }
 0x27a   :  { %2048 = vmatpush3.bf16.msra.mxu1 %v2047_v62  ;;  %v1403_v62 = vld [vmem:[#allocation22 + $0xb8] sm:$0xff] }
 0x2b3   :  { %v760_v3 = vpop.f32.mrb[0].mxu0 }
 0x2b4   :  { %v1817_v4 = vpop.f32.mrb[1].mxu0 }
 0x2b5   :  { %v2049_v4 = vpack.c.bf16 %v1052_v2, %v1048_v63  ;;  %v2091_v63 = vpack.c.bf16 %v1385_v60, %v1384_v59  ;;  %v2093_v2 = vpack.c.bf16 %v1403_v62, %v1402_v61  ;;  %v1392_v60 = vld [vmem:[#allocation22 + $0x60] sm:$0xff]  ;;  %v1393_v61 = vld [vmem:[#allocation22 + $0x68] sm:$0xff] }
 0x2b6   :  { %v2107_v62 = vpack.c.bf16 %v1393_v61, %v1392_v60 }
 0x330   :  { %v2959_v43 = vpop.f32.mrb[4].mxu1 }
 0x331   :  { %v764_v5 = vmul.f32 %v760_v3, %v2959_v43  ;;  %v685_v6 = vpop.f32.mrb[5].mxu1  ;;  %v1047_v3 = vld [vmem:[#allocation20] sm:$0xff] }
 0x332   :  { %v1056_v6 = vld [vmem:[#allocation20 + $0x48] sm:$0xff] }
 0x333   :  { %1851 = vmatmul.mubr.f32.vlgmr.msra.gmra.mrb[2].mxu0 %v764_v5  ;;  %v1051_v5 = vld [vmem:[#allocation20 + $0x20] sm:$0xff]  ;;  %v2053_v9 = vpack.c.bf16 %v1060_v7, %v1056_v6  ;;  %v1405_v6 = vld [vmem:[#allocation22 + $0xc8] sm:$0xff] }
 0x334   :  { %1885 = vmatprep.mubr.msk.f32.mxu0 %vm2532_vm0, %v2533_v1  ;;  %2003 = vmatpush3.bf16.msra.mxu0 %v2002_v10  ;;  %v2051_v8 = vpack.c.bf16 %v1051_v5, %v1047_v3  ;;  %v1055_v10 = vld [vmem:[#allocation20 + $0x40] sm:$0xff]  ;;  %v1386_v3 = vld [vmem:[#allocation22 + $0x30] sm:$0xff] }
 0x335   :  { %2004 = vmatprep.subr.bf16.mxu0 %v2531_v0  ;;  %v2055_v15 = vpack.c.bf16 %v1059_v12, %v1055_v10  ;;  %v1404_v5 = vld [vmem:[#allocation22 + $0xc0] sm:$0xff]  ;;  %v1389_v10 = vld [vmem:[#allocation22 + $0x48] sm:$0xff]  ;;  %v1406_v12 = vld [vmem:[#allocation22 + $0xd0] sm:$0xff] }
 0x338   :  { %2006 = vmatpush3.bf16.msra.mxu0 %v2005_v13  ;;  %v1050_v13 = vld [vmem:[#allocation20 + $0x18] sm:$0xff] }
 0x339   :  { %2007 = vmatprep.subr.bf16.mxu0 %v2531_v0 }
 0x33c   :  { %2009 = vmatpush3.bf16.msra.mxu0 %v2008_v16  ;;  %v2057_v16 = vpack.c.bf16 %v1054_v14, %v1050_v13  ;;  %v1407_v13 = vld [vmem:[#allocation22 + $0xd8] sm:$0xff] }
 0x33d   :  { %2010 = vmatprep.subr.bf16.mxu0 %v2531_v0 }
 0x340   :  { %2012 = vmatpush3.bf16.msra.mxu0 %v2011_v19  ;;  %v1062_v19 = vld [vmem:[#allocation20 + $0x78] sm:$0xff] }
 0x341   :  { %2013 = vmatprep.subr.bf16.mxu0 %v2531_v0 }
 0x344   :  { %2015 = vmatpush3.bf16.msra.mxu0 %v2014_v23  ;;  %v1032_v23 = vld [vmem:[#allocation19 + $0x8] sm:$0xff] }
 0x345   :  { %2016 = vmatprep.subr.bf16.mxu0 %v2531_v0 }
 0x348   :  { %2018 = vmatpush3.bf16.msra.mxu0 %v2017_v26  ;;  %v2065_v26 = vpack.c.bf16 %v1036_v24, %v1032_v23  ;;  %v1046_v23 = vld [vmem:[#allocation19 + $0x78] sm:$0xff] }
 0x349   :  { %2019 = vmatprep.subr.bf16.mxu0 %v2531_v0 }
 0x34c   :  { %2021 = vmatpush3.bf16.msra.mxu0 %v2020_v29  ;;  %v1040_v29 = vld [vmem:[#allocation19 + $0x48] sm:$0xff] }
 0x34d   :  { %2022 = vmatprep.subr.bf16.mxu0 %v2531_v0  ;;  %v1049_v0 = vld [vmem:[#allocation20 + $0x10] sm:$0xff] }
 0x350   :  { %2024 = vmatpush3.bf16.msra.mxu0 %v2023_v32  ;;  %v2069_v32 = vpack.c.bf16 %v1044_v30, %v1040_v29  ;;  %v1428_v29 = vld [vmem:[#allocation22 + $0x180] sm:$0xff]  ;;  %v1429_v30 = vld [vmem:[#allocation22 + $0x188] sm:$0xff] }
 0x351   :  { %2050 = vmatprep.subr.bf16.mxu0 %v2049_v4  ;;  %v1387_v4 = vld [vmem:[#allocation22 + $0x38] sm:$0xff]  ;;  %v2113_v33 = vpack.c.bf16 %v1429_v30, %v1428_v29 }
 0x352   :  { %v2095_v7 = vpack.c.bf16 %v1387_v4, %v1386_v3  ;;  %v1410_v4 = vld [vmem:[#allocation22 + $0xf0] sm:$0xff] }
 0x406   :  { %v847_v38 = vpop.f32.mrb[2].mxu0 }
 0x407   :  { %v1852_v20 = vpop.f32.mrb[3].mxu0  ;;  %851 = vmax.xlane.f32.xlu0 %v847_v38 }
 0x408   :  { %v2061_v20 = vpack.c.bf16 %v1062_v19, %v1058_v18  ;;  %v1409_v18 = vld [vmem:[#allocation22 + $0xe8] sm:$0xff] }
 0x494   :  { %v852_v47 = vpop.xlane.xlu0 %851 }
 0x495   :  { %v853_v48 = vsub.f32 %v847_v38, %v852_v47  ;;  %v2059_v38 = vpack.c.bf16 %v1053_v17, %v1049_v0  ;;  %v1380_v47 = vld [vmem:[#allocation22] sm:$0xff]  ;;  %v1391_v0 = vld [vmem:[#allocation22 + $0x58] sm:$0xff] }
 0x496   :  { %v1408_v17 = vld [vmem:[#allocation22 + $0xe0] sm:$0xff] }
 0x497   :  { %v854_v49 = vmul.f32 1.442695, %v853_v48 }
 0x499   :  { %2186 = vpow2.f32 %v854_v49  ;;  %v1381_v49 = vld [vmem:[#allocation22 + $0x8] sm:$0xff] }
 0x49a   :  { %v2083_v53 = vpack.c.bf16 %v1381_v49, %v1380_v47  ;;  %v1417_v47 = vld [vmem:[#allocation22 + $0x128] sm:$0xff]  ;;  %v1435_v49 = vld [vmem:[#allocation22 + $0x1b8] sm:$0xff] }
 0x4a3   :  { %v2999_v50 = vpop.eup %2186 }
 0x4a4   :  { %1886 = vmatmul.mubr.f32.vlgmr.msra.gmra.mrb[4].mxu0 %v2999_v50 }
 0x4a5   :  { %1127 = vmatprep.mubr.f32.mxu0 %v2533_v1  ;;  %2052 = vmatpush1.bf16.msra.mxu0 %v2051_v8  ;;  %v2097_v8 = vpack.c.bf16 %v1405_v6, %v1404_v5  ;;  %v1411_v5 = vld [vmem:[#allocation22 + $0xf8] sm:$0xff]  ;;  %v1422_v6 = vld [vmem:[#allocation22 + $0x150] sm:$0xff] }
 0x4a6   :  { %2054 = vmatprep.subr.bf16.mxu0 %v2053_v9  ;;  %v1388_v9 = vld [vmem:[#allocation22 + $0x40] sm:$0xff] }
 0x4a7   :  { %v2099_v14 = vpack.c.bf16 %v1389_v10, %v1388_v9  ;;  %v1394_v9 = vld [vmem:[#allocation22 + $0x70] sm:$0xff]  ;;  %v1395_v10 = vld [vmem:[#allocation22 + $0x78] sm:$0xff] }
 0x4a9   :  { %2056 = vmatpush1.bf16.msra.mxu0 %v2055_v15  ;;  %v2101_v15 = vpack.c.bf16 %v1407_v13, %v1406_v12  ;;  %v2111_v13 = vpack.c.bf16 %v1395_v10, %v1394_v9 }
 0x4aa   :  { %2058 = vmatprep.subr.bf16.mxu0 %v2057_v16  ;;  %v1390_v16 = vld [vmem:[#allocation22 + $0x50] sm:$0xff] }
 0x4ab   :  { %v2103_v19 = vpack.c.bf16 %v1391_v0, %v1390_v16  ;;  %v1424_v0 = vld [vmem:[#allocation22 + $0x160] sm:$0xff] }
 0x4ac   :  { %1625 = vmatmul.mubr.msk.f32.vlgmr.msra.gmra.mrb[6].mxu0 %vm244_vm1, %v2829_v11 }
 0x4ad   :  { %2060 = vmatpush1.bf16.msra.mxu0 %v2059_v38  ;;  %1198 = vmatprep.mubr.f32.mxu0 %v2533_v1  ;;  %v2105_v38 = vpack.c.bf16 %v1409_v18, %v1408_v17  ;;  %v1425_v17 = vld [vmem:[#allocation22 + $0x168] sm:$0xff] }
 0x4ae   :  { %2062 = vmatprep.subr.bf16.mxu0 %v2061_v20  ;;  %v1033_v20 = vld [vmem:[#allocation19 + $0x10] sm:$0xff]  ;;  %v2139_v18 = vpack.c.bf16 %v1425_v17, %v1424_v0 }
 0x4af   :  { %v2075_v24 = vpack.c.bf16 %v1037_v21, %v1033_v20  ;;  %v1426_v21 = vld [vmem:[#allocation22 + $0x170] sm:$0xff] }
 0x4b1   :  { %2064 = vmatpush1.bf16.msra.mxu0 %v2063_v25  ;;  %v2077_v25 = vpack.c.bf16 %v1046_v23, %v1042_v22  ;;  %v1427_v22 = vld [vmem:[#allocation22 + $0x178] sm:$0xff] }
 0x4b2   :  { %2066 = vmatprep.subr.bf16.mxu0 %v2065_v26  ;;  %v1041_v26 = vld [vmem:[#allocation19 + $0x50] sm:$0xff]  ;;  %v2143_v23 = vpack.c.bf16 %v1427_v22, %v1426_v21 }
 0x4b4   :  { %1626 = vmatmul.mubr.msk.f32.vlgmr.msra.gmra.mrb[8].mxu0 %vm244_vm1, %v2829_v11  ;;  %v1396_v11 = vld [vmem:[#allocation22 + $0x80] sm:$0xff] }
 0x4b5   :  { %2068 = vmatpush1.bf16.msra.mxu0 %v2067_v31  ;;  %1272 = vmatprep.mubr.f32.mxu0 %v2533_v1  ;;  %v2081_v48 = vpack.c.bf16 %v1397_v46, %v1396_v11  ;;  %v1416_v46 = vld [vmem:[#allocation22 + $0x120] sm:$0xff] }
 0x4b6   :  { %2070 = vmatprep.subr.bf16.mxu0 %v2069_v32  ;;  %v2079_v32 = vpack.c.bf16 %v1045_v27, %v1041_v26  ;;  %v2123_v51 = vpack.c.bf16 %v1417_v47, %v1416_v46  ;;  %v1350_v27 = vld [vmem:[%s3075_s16] sm:$0xf] }
 0x4b7   :  { %2082 = vmatprep.subr.bf16.mxu1 %v2081_v48  ;;  %v1434_v48 = vld [vmem:[#allocation22 + $0x1b0] sm:$0xff] }
 0x4b8   :  { %v2125_v52 = vpack.c.bf16 %v1435_v49, %v1434_v48 }
 0x4b9   :  { %2072 = vmatpush1.bf16.msra.mxu0 %v2071_v35  ;;  %v1413_v35 = vld [vmem:[#allocation22 + $0x108] sm:$0xff] }
 0x4ba   :  { %2074 = vmatprep.subr.bf16.mxu0 %v2073_v45  ;;  %v1433_v45 = vld [vmem:[#allocation22 + $0x1a8] sm:$0xff] }
 0x577   :  { %v938_v36 = vpop.f32.mrb[4].mxu0 }
 0x578   :  { %2188 = vrcp.f32 %v938_v36  ;;  %v1887_v37 = vpop.f32.mrb[5].mxu0  ;;  %v1430_v36 = vld [vmem:[#allocation22 + $0x190] sm:$0xff] }
 0x579   :  { %v1431_v37 = vld [vmem:[#allocation22 + $0x198] sm:$0xff] }
 0x582   :  { %v2189_v39 = vpop.eup %2188 }
 0x583   :  { %v943_v40 = vmul.f32 %v2189_v39, %v2999_v50  ;;  %v1400_v50 = vld [vmem:[#allocation22 + $0xa0] sm:$0xff]  ;;  %v2115_v39 = vpack.c.bf16 %v1413_v35, %v1412_v34 }
 0x584   :  { %v2089_v58 = vpack.c.bf16 %v1401_v57, %v1400_v50 }
 0x585   :  { %v944_v41 = vmul.f32 %v943_v40, %v2959_v43  ;;  %v2087_v43 = vpack.c.bf16 %v1383_v56, %v1382_v55  ;;  %v2117_v40 = vpack.c.bf16 %v1431_v37, %v1430_v36  ;;  %v1436_v55 = vld [vmem:[#allocation22 + $0x1c0] sm:$0xff]  ;;  %v1437_v56 = vld [vmem:[#allocation22 + $0x1c8] sm:$0xff] }
 0x586   :  { %v2129_v57 = vpack.c.bf16 %v1437_v56, %v1436_v55 }
 0x587   :  { %1921 = vmatmul.mubr.f32.vlgmr.msra.gmra.mrb[6].mxu1 %v944_v41  ;;  %v1414_v41 = vld [vmem:[#allocation22 + $0x110] sm:$0xff] }
 0x588   :  { %2084 = vmatpush3.bf16.msra.mxu1 %v2083_v53  ;;  %v2119_v11 = vpack.c.bf16 %v1415_v42, %v1414_v41  ;;  %v1418_v53 = vld [vmem:[#allocation22 + $0x130] sm:$0xff] }
 0x589   :  { %2086 = vmatprep.subr.bf16.mxu1 %v2085_v54  ;;  %v1419_v54 = vld [vmem:[#allocation22 + $0x138] sm:$0xff] }
 0x58a   :  { %v2127_v50 = vpack.c.bf16 %v1419_v54, %v1418_v53 }
 0x58c   :  { %2088 = vmatpush3.bf16.msra.mxu1 %v2087_v43  ;;  %v1420_v43 = vld [vmem:[#allocation22 + $0x140] sm:$0xff] }
 0x58d   :  { %2090 = vmatprep.subr.bf16.mxu1 %v2089_v58  ;;  %v1421_v58 = vld [vmem:[#allocation22 + $0x148] sm:$0xff] }
 0x58e   :  { %v2131_v59 = vpack.c.bf16 %v1421_v58, %v1420_v43 }
 0x590   :  { %2092 = vmatpush3.bf16.msra.mxu1 %v2091_v63  ;;  %v1438_v63 = vld [vmem:[#allocation22 + $0x1d0] sm:$0xff] }
 0x591   :  { %2094 = vmatprep.subr.bf16.mxu1 %v2093_v2  ;;  %v1439_v2 = vld [vmem:[#allocation22 + $0x1d8] sm:$0xff] }
 0x592   :  { %v2133_v3 = vpack.c.bf16 %v1439_v2, %v1438_v63 }
 0x594   :  { %2096 = vmatpush3.bf16.msra.mxu1 %v2095_v7  ;;  %v2109_v7 = vpack.c.bf16 %v1411_v5, %v1410_v4 }
 0x595   :  { %2098 = vmatprep.subr.bf16.mxu1 %v2097_v8  ;;  %v1423_v8 = vld [vmem:[#allocation22 + $0x158] sm:$0xff] }
 0x596   :  { %v2135_v12 = vpack.c.bf16 %v1423_v8, %v1422_v6 }
 0x598   :  { %2100 = vmatpush3.bf16.msra.mxu1 %v2099_v14  ;;  %v1440_v14 = vld [vmem:[#allocation22 + $0x1e0] sm:$0xff] }
 0x599   :  { %2102 = vmatprep.subr.bf16.mxu1 %v2101_v15  ;;  %v1441_v15 = vld [vmem:[#allocation22 + $0x1e8] sm:$0xff] }
 0x59a   :  { %v2137_v16 = vpack.c.bf16 %v1441_v15, %v1440_v14 }
 0x59c   :  { %2104 = vmatpush3.bf16.msra.mxu1 %v2103_v19  ;;  %v1442_v19 = vld [vmem:[#allocation22 + $0x1f0] sm:$0xff] }
 0x59d   :  { %2106 = vmatprep.subr.bf16.mxu1 %v2105_v38  ;;  %v1443_v38 = vld [vmem:[#allocation22 + $0x1f8] sm:$0xff] }
 0x59e   :  { %v2141_v20 = vpack.c.bf16 %v1443_v38, %v1442_v19 }
 0x5a0   :  { %2108 = vmatpush3.bf16.msra.mxu1 %v2107_v62 }
 0x5a1   :  { %2110 = vmatprep.subr.bf16.mxu1 %v2109_v7 }
 0x5a4   :  { %2112 = vmatpush3.bf16.msra.mxu1 %v2111_v13 }
 0x65a   :  { %v1027_v28 = vpop.f32.mrb[6].mxu1 }
 0x65b   :  { %v1922_v31 = vpop.f32.mrb[7].mxu1  ;;  %1627 = vmatmul.mubr.msk.f32.vlgmr.msra.gmra.mrb[6].mxu0 %vm244_vm1, %v1027_v28 }
 0x65c   :  { %2076 = vmatpush1.bf16.msra.mxu0 %v2075_v24  ;;  %1343 = vmatprep.mubr.f32.mxu0 %v2533_v1  ;;  %v2121_v1 = vpack.c.bf16 %v1433_v45, %v1432_v44  ;;  %v1352_v24 = vlaneseq }
 0x65d   :  { %2078 = vmatprep.subr.bf16.mxu0 %v2077_v25 }
 0x65e   :  { %v1353_v25 = vshrl.u32 %v1352_v24, 7 }
 0x660   :  { %2080 = vmatpush1.bf16.msra.mxu0 %v2079_v32  ;;  %v1354_v26 = vsub.s32 0, %v1353_v25  ;;  %v1362_v34 = vsub.s32 2, %v1353_v25  ;;  %v1366_v36 = vsub.s32 3, %v1353_v25 }
 0x661   :  { %2114 = vmatprep.subr.bf16.mxu0 %v2113_v33 }
 0x662   :  { %v1355_v29 = vrot.slane %v1350_v27, %v1354_v26  ;;  %v1367_v41 = vrot.slane %v1350_v27, %v1366_v36 }
 0x663   :  { %1628 = vmatmul.mubr.msk.f32.vlgmr.msra.gmra.mrb[8].mxu0 %vm244_vm1, %v1027_v28  ;;  %v1358_v28 = vsub.s32 1, %v1353_v25 }
 0x664   :  { %2116 = vmatpush3.bf16.msra.mxu0 %v2115_v39 }
 0x665   :  { %2118 = vmatprep.subr.bf16.mxu0 %v2117_v40  ;;  %v1359_v30 = vrot.slane %v1350_v27, %v1358_v28  ;;  %v1363_v40 = vrot.slane %v1350_v27, %v1362_v34 }
 0x668   :  { %2120 = vmatpush3.bf16.msra.mxu0 %v2119_v11 }
 0x669   :  { %2122 = vmatprep.subr.bf16.mxu0 %v2121_v1 }
 0x66c   :  { %2124 = vmatpush3.bf16.msra.mxu0 %v2123_v51  ;;  %v1629_v51 = vld [vmem:[%s3077_s18] ss:$0 sm:$0xff] }
 0x66d   :  { %2126 = vmatprep.subr.bf16.mxu0 %v2125_v52 }
 0x670   :  { %2128 = vmatpush3.bf16.msra.mxu0 %v2127_v50 }
 0x671   :  { %2130 = vmatprep.subr.bf16.mxu0 %v2129_v57 }
 0x674   :  { %2132 = vmatpush3.bf16.msra.mxu0 %v2131_v59 }
 0x675   :  { %2134 = vmatprep.subr.bf16.mxu0 %v2133_v3 }
 0x678   :  { %2136 = vmatpush3.bf16.msra.mxu0 %v2135_v12 }
 0x679   :  { %2138 = vmatprep.subr.bf16.mxu0 %v2137_v16 }
 0x67c   :  { %2140 = vmatpush3.bf16.msra.mxu0 %v2139_v18 }
 0x67d   :  { %2142 = vmatprep.subr.bf16.mxu0 %v2141_v20 }
 0x680   :  { %2144 = vmatpush3.bf16.msra.mxu0 %v2143_v23 }
 0x72e   :  { %v1274_v31 = vpop.f32.mrb[6].mxu0 }
 0x72f   :  { %v1372_v32 = vadd.f32 %v1355_v29, %v1274_v31  ;;  %v1276_v33 = vpop.f32.mrb[7].mxu0 }
 0x730   :  { %v1373_v35 = vadd.f32 %v1359_v30, %v1276_v33 }
 0x731   :  { %v1376_v39 = vmax.f32 %v1372_v32, 0.0 }
 0x732   :  { %v1377_v37 = vmax.f32 %v1373_v35, 0.0 }
 0x734   :  { %1515 = vmatprep.mubr.f32.mxu1 %v1377_v37 }
 0x735   :  { %1516 = vmatmul.mubr.f32.vlgmr.msra.gmra.mrb[8].mxu1 %v1376_v39 }
 0x736   :  { %v1345_v42 = vpop.f32.mrb[8].mxu0 }
 0x737   :  { %v1374_v44 = vadd.f32 %v1363_v40, %v1345_v42  ;;  %v1347_v45 = vpop.f32.mrb[9].mxu0 }
 0x738   :  { %v1375_v11 = vadd.f32 %v1367_v41, %v1347_v45 }
 0x739   :  { %v1378_v46 = vmax.f32 %v1374_v44, 0.0 }
 0x73a   :  { %v1379_v1 = vmax.f32 %v1375_v11, 0.0 }
 0x73c   :  { %1585 = vmatprep.mubr.f32.mxu0 %v1379_v1 }
 0x73d   :  { %1586 = vmatmul.mubr.f32.vlgmr.msra.gmra.mrb[10].mxu0 %v1378_v46 }
 0x808   :  { %v1734_v47 = vpop.f32.mrb[8].mxu1 }
 0x809   :  { %v1735_v48 = vpop.f32.mrb[9].mxu1 }
 0x80a   :  { %v1736_v49 = vadd.f32 %v1735_v48, %v1734_v47 }
 0x80c   :  { %v1518_v54 = vadd.f32 %v1736_v49, %v1629_v51 }
 0x810   :  { %v1769_v52 = vpop.f32.mrb[10].mxu0 }
 0x811   :  { %v1770_v53 = vpop.f32.mrb[11].mxu0 }
 0x812   :  { %v1771_v55 = vadd.f32 %v1770_v53, %v1769_v52 }
 0x814   :  { %v1588_v56 = vadd.f32 %v1771_v55, %v1518_v54 }
 0x816   :  { %1591 = vst [vmem:[#allocation23] sm:$0xff] %v1588_v56 }
 0x817   :  { %2487 = shalt.err (!%p2484_p10)
}
 0x818   :  { %s2488_s18 = scalar_lea.hbm %s3078_s19, 128 }
 0x819   :  { %p2489_p11 = scmp.ne.s32.totalorder %s3078_s19, %s2488_s18  ;;  %p2492_p12 = scmp.lt.u32.totalorder %s2488_s18, %s3078_s19 }
 0x81b   :  { %p2494_p13 = pnand %p2492_p12, %p2489_p11 }
 0x81d   :  { %2497 = shalt.err (!%p2494_p13)
}
 0x81e   :  { %1601 = dma.vmem_to_hbm [thread:$0]  %s1599_s4, 128, %s3078_s19, [#allocation4]  }
 0x81f   :  { %2512 = dma.done.wait [#allocation4], 128  }
 0x820   :  { %2513 = vsyncadd [#allocation4], 4294967168 }
 0x821   :  { %1605 = vsyncpa [#allocation3], 1 }
 0x822   :  { %1606 = vsyncpa [#allocation6], 1 }
 0x823   :  { %1607 = vsyncpa [#allocation9], 1 }
 0x824   :  { %1608 = vsyncpa [#allocation12], 1 }
 0x825   :  { %1609 = vsyncpa [#allocation15], 1 }
 0x826   :  { %1610 = vsyncpa [#allocation18], 1 }
 0x827   :  { %1611 = vsyncpa [#allocation21], 1 }
 0x828   :  { %1612 = vsyncpa [#allocation4], 1 }

</bundles_post_ra>
